<compile_context>
chip_gen: v6e
topology: v6e:2x2x1
jax: 0.10.0
libtpu: 0.0.40
codegen_flags: <defaults>
</compile_context>

<pallas_src>
import jax
import jax.numpy as jnp
from jax.experimental import pallas as pl
from jax.experimental.pallas import tpu as pltpu


# ---------------------------------------------------------------------------
# fused kernel
# ---------------------------------------------------------------------------

def _make_fused_kernel(H, W, Cg, Cin, expand, half, comb, Cout, cmax):
    HW = H * W

    def shift_lanes(x, off):
        """y[:, i] = x[:, i + off] if 0 <= i + off < HW else 0 (static off)."""
        if off == 0:
            return x
        pad = jnp.zeros((x.shape[0], abs(off)), x.dtype)
        if off > 0:
            return jnp.concatenate([x[:, off:], pad], axis=1)
        return jnp.concatenate([pad, x[:, :off]], axis=1)

    def kernel(guide_ref, pred_ref, wf1_ref, wf2_ref, wg1_ref, wg2_ref,
               wc1_ref, wc2_ref, wred_ref, sw1_ref, sw2_ref, ball_ref, o_ref):
        f32 = jnp.float32

        # Horizontal-tap validity masks (hoisted: computed once, reused by all 3x3s).
        col = jax.lax.broadcasted_iota(jnp.int32, (1, HW), 1) % W
        m_dx = {-1: (col >= 1).astype(f32), 0: None, 1: (col <= W - 2).astype(f32)}

        biases = ball_ref[...].astype(f32)                     # (cmax, 7)

        def bias_col(j, cout):
            return biases[:cout, j:j + 1]                      # (cout, 1)

        def conv3x3(parts, j, cout):
            """3x3 conv + folded BN + ReLU.  parts: [(x:(cin,HW) f32, w9_ref, col0)]."""
            loaded = [(x, w9_ref[...], c0) for (x, w9_ref, c0) in parts]
            acc = jnp.zeros((cout, HW), f32)
            for ky in range(3):
                for kx in range(3):
                    dy, dx = ky - 1, kx - 1
                    off = dy * W + dx
                    tap = ky * 3 + kx
                    m = m_dx[dx]
                    for x, w_full, c0 in loaded:
                        xt = shift_lanes(x, off)
                        if m is not None:
                            xt = xt * m
                        w_tap = w_full[tap][:, c0:c0 + x.shape[0]]   # (cout, cin)
                        acc = acc + jnp.dot(w_tap, xt, preferred_element_type=f32)
            return jnp.maximum(acc + bias_col(j, cout), 0.0)

        def conv1x1(x, w_ref, j, cout, relu=True):
            acc = jnp.dot(w_ref[...], x, preferred_element_type=f32) + bias_col(j, cout)
            return jnp.maximum(acc, 0.0) if relu else acc

        pred = pred_ref[0].astype(f32)                          # (Cin, HW)
        guide = guide_ref[0].astype(f32)                        # (Cg, HW)

        # feature branch: 3x3 conv+BN+ReLU -> 1x1 conv+BN+ReLU
        x = conv3x3([(pred, wf1_ref, 0)], 0, expand)
        x = conv1x1(x, wf2_ref, 1, half)
        # guide branch (guidance_type == 'full')
        y = conv3x3([(guide, wg1_ref, 0)], 2, expand)
        y = conv1x1(y, wg2_ref, 3, half)

        # SELayer(comb, reduction=1) on the virtual concat [x, y] (never materialized):
        #   h   = relu(W1 @ mean(xy))   -- 1/HW folded into sw1; sum commutes with fc1
        #   att = sigmoid(W2 @ h)       -- evaluated lane-wide (no N=1 matmuls)
        sw1 = sw1_ref[...]
        h = jnp.maximum(
            jnp.sum(jnp.dot(sw1[:, :half], x, preferred_element_type=f32)
                    + jnp.dot(sw1[:, half:], y, preferred_element_type=f32),
                    axis=-1, keepdims=True), 0.0)               # (comb, 1)
        att = jax.nn.sigmoid(
            jnp.dot(sw2_ref[...], jnp.broadcast_to(h, (comb, HW)),
                    preferred_element_type=f32))                # (comb, HW), cols equal
        x = x * att[:half]
        y = y * att[half:]

        # combination branch on [x, y] (c1 weights sliced per half in-kernel)
        r = conv3x3([(x, wc1_ref, 0), (y, wc1_ref, half)], 4, expand)
        r = conv1x1(r, wc2_ref, 5, Cin)

        # reduce(residual + pred): 1x1 conv with bias, no ReLU
        out = jnp.dot(wred_ref[...], r + pred, preferred_element_type=f32)
        out = out + bias_col(6, Cout)
        o_ref[0] = out.astype(o_ref.dtype)                      # lane-dense store

    return kernel


# ---------------------------------------------------------------------------
# wrapper: fold BN, pack weights/biases, one pallas_call
# ---------------------------------------------------------------------------

def aux_upsampling_block_forward(guide, pred, p, *, compute_dtype=None):
    """AuxUpsamplingBlock forward (guidance_type='full', channel_attention=True)."""
    B, Cin, H, W = pred.shape
    Cg = guide.shape[1]
    HW = H * W
    expand = p["f1_w"].shape[0]
    half = p["f2_w"].shape[0]
    comb = 2 * half
    Cout = p["red_w"].shape[0]
    cmax = max(expand, half, Cin, Cout)
    f32 = jnp.float32
    eps = 1e-5

    def fold3(w, b, bn):                       # 3x3 conv + BN -> (9,Cout,Cin), shift
        gamma, beta, mean, var = bn
        s = gamma / jnp.sqrt(var + eps)
        t = (b - mean) * s + beta
        w9 = jnp.transpose(w.astype(f32) * s[:, None, None, None], (2, 3, 0, 1))
        return w9.reshape(9, w.shape[0], w.shape[1]), t.astype(f32)

    def fold1(w, b, bn):                       # 1x1 conv + BN -> (Cout,Cin), shift
        gamma, beta, mean, var = bn
        s = gamma / jnp.sqrt(var + eps)
        t = (b - mean) * s + beta
        return w.reshape(w.shape[0], w.shape[1]).astype(f32) * s[:, None], t.astype(f32)

    wf1, tf1 = fold3(p["f1_w"], p["f1_b"], p["f1_bn"])
    wf2, tf2 = fold1(p["f2_w"], p["f2_b"], p["f2_bn"])
    wg1, tg1 = fold3(p["g1_w"], p["g1_b"], p["g1_bn"])
    wg2, tg2 = fold1(p["g2_w"], p["g2_b"], p["g2_bn"])
    wc1, tc1 = fold3(p["c1_w"], p["c1_b"], p["c1_bn"])
    wc2, tc2 = fold1(p["c2_w"], p["c2_b"], p["c2_bn"])
    wred = p["red_w"].reshape(Cout, Cin).astype(f32)
    tred = p["red_b"].astype(f32)

    sw1 = p["se_w1"].astype(f32) / float(HW)   # fold the SE mean's 1/HW into fc1 (f32)
    sw2 = p["se_w2"].astype(f32)

    padc = lambda v: jnp.pad(v, (0, cmax - v.shape[0]))
    b_all = jnp.stack([padc(t) for t in (tf1, tf2, tg1, tg2, tc1, tc2, tred)], axis=1)

    # bf16 streaming on v6e/v7x if requested; f32 by default (test numerics).
    act_dtype = jnp.dtype(compute_dtype) if compute_dtype is not None else pred.dtype
    guide3 = guide.reshape(B, Cg, HW).astype(act_dtype)
    pred3 = pred.reshape(B, Cin, HW).astype(act_dtype)

    kernel = _make_fused_kernel(H, W, Cg, Cin, expand, half, comb, Cout, cmax)
    c2 = lambda b: (0, 0)
    c3 = lambda b: (0, 0, 0)

    out3 = pl.pallas_call(
        kernel,
        out_shape=jax.ShapeDtypeStruct((B, Cout, HW), pred.dtype),
        grid_spec=pltpu.PrefetchScalarGridSpec(
            num_scalar_prefetch=0,
            grid=(B,),                                   # >= 2 -> both v7x TCs busy
            in_specs=[
                pl.BlockSpec((1, Cg, HW), lambda b: (b, 0, 0)),
                pl.BlockSpec((1, Cin, HW), lambda b: (b, 0, 0)),
                pl.BlockSpec((9, expand, Cin), c3),      # grid-invariant weights:
                pl.BlockSpec((half, expand), c2),        #   fetched once
                pl.BlockSpec((9, expand, Cg), c3),
                pl.BlockSpec((half, expand), c2),
                pl.BlockSpec((9, expand, comb), c3),
                pl.BlockSpec((Cin, expand), c2),
                pl.BlockSpec((Cout, Cin), c2),
                pl.BlockSpec((comb, comb), c2),
                pl.BlockSpec((comb, comb), c2),
                pl.BlockSpec((cmax, 7), c2),             # packed folded biases
            ],
            out_specs=pl.BlockSpec((1, Cout, HW), lambda b: (b, 0, 0)),
        ),
        compiler_params=pltpu.CompilerParams(
            dimension_semantics=("parallel",),
            vmem_limit_bytes=16 << 20,                   # blocks are only a few 100 KB
        ),
    )(guide3, pred3, wf1, wf2, wg1, wg2, wc1, wc2, wred, sw1, sw2, b_all)
    return out3.reshape(B, Cout, H, W)


# ---------------------------------------------------------------------------
# pure-JAX reference (mirrors the PyTorch forward, eval-mode BatchNorm)
# ---------------------------------------------------------------------------

def _ref_forward(guide, pred, p):
    eps = 1e-5

    def conv(x, w, b, pad):
        y = jax.lax.conv_general_dilated(
            x, w, window_strides=(1, 1), padding=[(pad, pad), (pad, pad)],
            dimension_numbers=("NCHW", "OIHW", "NCHW"))
        return y + b[None, :, None, None]

    def bn(x, prm):
        g, bta, m, v = prm
        return ((x - m[None, :, None, None]) / jnp.sqrt(v[None, :, None, None] + eps)
                * g[None, :, None, None] + bta[None, :, None, None])

    relu = lambda z: jnp.maximum(z, 0.0)

    x = relu(bn(conv(pred, p["f1_w"], p["f1_b"], 1), p["f1_bn"]))
    x = relu(bn(conv(x, p["f2_w"], p["f2_b"], 0), p["f2_bn"]))
    y = relu(bn(conv(guide, p["g1_w"], p["g1_b"], 1), p["g1_bn"]))
    y = relu(bn(conv(y, p["g2_w"], p["g2_b"], 0), p["g2_bn"]))
    xy = jnp.concatenate([x, y], axis=1)

    se = jnp.mean(xy, axis=(2, 3))                           # (B, comb)
    se = jnp.maximum(se @ p["se_w1"].T, 0.0)                 # nn.Linear convention
    se = jax.nn.sigmoid(se @ p["se_w2"].T)
    xy = xy * se[:, :, None, None]

    r = relu(bn(conv(xy, p["c1_w"], p["c1_b"], 1), p["c1_bn"]))
    r = relu(bn(conv(r, p["c2_w"], p["c2_b"], 0), p["c2_bn"]))
    return conv(r + pred, p["red_w"], p["red_b"], 0)


if __name__ == "__main__":
    # AuxUpsamplingBlock defaults (guidance_type='full', channel_attention=True).
    B, H, W = 2, 16, 16                      # H*W = 256 -> lane-dense blocks
    in_features, expand_features, out_features = 8, 8, 4
    guide_features = 3
    half = expand_features // 2              # 4
    comb = half * 2                          # 8 (SELayer channel, reduction=1)

    key = jax.random.PRNGKey(0)
    keys = iter(jax.random.split(key, 64))

    def conv_p(cout, cin, k):
        w = jax.random.normal(next(keys), (cout, cin, k, k), jnp.float32) * 0.1
        b = jax.random.normal(next(keys), (cout,), jnp.float32) * 0.1
        return w, b

    def bn_p(c):
        gamma = jax.random.uniform(next(keys), (c,), jnp.float32, 0.5, 1.5)
        beta = jax.random.normal(next(keys), (c,), jnp.float32) * 0.1
        mean = jax.random.normal(next(keys), (c,), jnp.float32) * 0.1
        var = jax.random.uniform(next(keys), (c,), jnp.float32, 0.5, 1.5)
        return gamma, beta, mean, var

    p = {}
    p["f1_w"], p["f1_b"] = conv_p(expand_features, in_features, 3);    p["f1_bn"] = bn_p(expand_features)
    p["f2_w"], p["f2_b"] = conv_p(half, expand_features, 1);           p["f2_bn"] = bn_p(half)
    p["g1_w"], p["g1_b"] = conv_p(expand_features, guide_features, 3); p["g1_bn"] = bn_p(expand_features)
    p["g2_w"], p["g2_b"] = conv_p(half, expand_features, 1);           p["g2_bn"] = bn_p(half)
    # SELayer(comb, reduction=1): bias-free Linear weights in nn.Linear (out, in) form.
    p["se_w1"] = jax.random.normal(next(keys), (comb, comb), jnp.float32) * (1.0 / comb ** 0.5)
    p["se_w2"] = jax.random.normal(next(keys), (comb, comb), jnp.float32) * (1.0 / comb ** 0.5)
    p["c1_w"], p["c1_b"] = conv_p(expand_features, comb, 3);           p["c1_bn"] = bn_p(expand_features)
    p["c2_w"], p["c2_b"] = conv_p(in_features, expand_features, 1);    p["c2_bn"] = bn_p(in_features)
    p["red_w"], p["red_b"] = conv_p(out_features, in_features, 1)

    guide = jax.random.normal(next(keys), (B, guide_features, H, W), jnp.float32)
    pred = jax.random.normal(next(keys), (B, in_features, H, W), jnp.float32)

    out = aux_upsampling_block_forward(guide, pred, p)
    out = jax.block_until_ready(out)

    ref = _ref_forward(guide, pred, p)
    assert out.shape == (B, out_features, H, W) and out.dtype == pred.dtype
    max_err = float(jnp.max(jnp.abs(out - ref)))
    assert jnp.allclose(out, ref, atol=1e-2, rtol=1e-2), f"max abs err {max_err}"

    print("KERNEL_OK")
</pallas_src>

<mosaic_0001>
module attributes {stable_mosaic.version = 11 : i64} {
  func.func @kernel(%arg0: i32, %arg1: memref<1x3x256xf32, #tpu.memory_space<vmem>>, %arg2: memref<1x8x256xf32, #tpu.memory_space<vmem>>, %arg3: memref<9x8x8xf32, #tpu.memory_space<vmem>>, %arg4: memref<4x8xf32, #tpu.memory_space<vmem>>, %arg5: memref<9x8x3xf32, #tpu.memory_space<vmem>>, %arg6: memref<4x8xf32, #tpu.memory_space<vmem>>, %arg7: memref<9x8x8xf32, #tpu.memory_space<vmem>>, %arg8: memref<8x8xf32, #tpu.memory_space<vmem>>, %arg9: memref<4x8xf32, #tpu.memory_space<vmem>>, %arg10: memref<8x8xf32, #tpu.memory_space<vmem>>, %arg11: memref<8x8xf32, #tpu.memory_space<vmem>>, %arg12: memref<8x7xf32, #tpu.memory_space<vmem>>, %arg13: memref<1x4x256xf32, #tpu.memory_space<vmem>>) attributes {dimension_semantics = [#tpu.dimension_semantics<parallel>], iteration_bounds = array<i64: 2>, scalar_prefetch = 0 : i64, scratch_operands = 0 : i64, tpu.core_type = #tpu.core_type<tc>, window_params = [{transform_indices = @transform_0, window_bounds = array<i64: 1, 3, 256>}, {transform_indices = @transform_1, window_bounds = array<i64: 1, 8, 256>}, {pipeline_mode = #tpu.pipeline_mode<synchronous>, transform_indices = @transform_2, window_bounds = array<i64: 9, 8, 8>}, {pipeline_mode = #tpu.pipeline_mode<synchronous>, transform_indices = @transform_3, window_bounds = array<i64: 4, 8>}, {pipeline_mode = #tpu.pipeline_mode<synchronous>, transform_indices = @transform_4, window_bounds = array<i64: 9, 8, 3>}, {pipeline_mode = #tpu.pipeline_mode<synchronous>, transform_indices = @transform_5, window_bounds = array<i64: 4, 8>}, {pipeline_mode = #tpu.pipeline_mode<synchronous>, transform_indices = @transform_6, window_bounds = array<i64: 9, 8, 8>}, {pipeline_mode = #tpu.pipeline_mode<synchronous>, transform_indices = @transform_7, window_bounds = array<i64: 8, 8>}, {pipeline_mode = #tpu.pipeline_mode<synchronous>, transform_indices = @transform_8, window_bounds = array<i64: 4, 8>}, {pipeline_mode = #tpu.pipeline_mode<synchronous>, transform_indices = @transform_9, window_bounds = array<i64: 8, 8>}, {pipeline_mode = #tpu.pipeline_mode<synchronous>, transform_indices = @transform_10, window_bounds = array<i64: 8, 8>}, {pipeline_mode = #tpu.pipeline_mode<synchronous>, transform_indices = @transform_11, window_bounds = array<i64: 8, 7>}, {transform_indices = @transform_12, window_bounds = array<i64: 1, 4, 256>}]} {
    %0 = tpu.iota {dimensions = array<i32: 1>} : vector<1x256xi32>
    %c16_i32 = arith.constant 16 : i32
    %c0_i32 = arith.constant 0 : i32
    %1 = arith.cmpi eq, %c16_i32, %c0_i32 : i32
    %c1_i32 = arith.constant 1 : i32
    %2 = arith.select %1, %c1_i32, %c16_i32 : i32
    %3 = vector.broadcast %2 : i32 to vector<1x256xi32>
    %4 = arith.remsi %0, %3 : vector<1x256xi32>
    %c0_i32_0 = arith.constant 0 : i32
    %5 = vector.broadcast %c0_i32_0 : i32 to vector<1x256xi32>
    %6 = arith.cmpi ne, %4, %5 : vector<1x256xi32>
    %c0_i32_1 = arith.constant 0 : i32
    %7 = vector.broadcast %c0_i32_1 : i32 to vector<1x256xi32>
    %8 = arith.cmpi slt, %4, %7 : vector<1x256xi32>
    %c0_i32_2 = arith.constant 0 : i32
    %9 = arith.cmpi slt, %2, %c0_i32_2 : i32
    %10 = vector.broadcast %9 : i1 to vector<1x256xi1>
    %11 = vector.broadcast %10 : vector<1x256xi1> to vector<1x256xi1>
    %12 = arith.xori %8, %11 : vector<1x256xi1>
    %13 = arith.andi %12, %6 : vector<1x256xi1>
    %14 = vector.broadcast %2 : i32 to vector<1x256xi32>
    %15 = arith.addi %4, %14 : vector<1x256xi32>
    %16 = arith.select %13, %15, %4 : vector<1x256xi1>, vector<1x256xi32>
    %c1_i32_3 = arith.constant 1 : i32
    %17 = vector.broadcast %c1_i32_3 : i32 to vector<1x256xi32>
    %18 = arith.cmpi sge, %16, %17 : vector<1x256xi32>
    %19 = arith.extui %18 : vector<1x256xi1> to vector<1x256xi32>
    %20 = arith.sitofp %19 : vector<1x256xi32> to vector<1x256xf32>
    %c14_i32 = arith.constant 14 : i32
    %21 = vector.broadcast %c14_i32 : i32 to vector<1x256xi32>
    %22 = arith.cmpi sle, %16, %21 : vector<1x256xi32>
    %23 = arith.extui %22 : vector<1x256xi1> to vector<1x256xi32>
    %24 = arith.sitofp %23 : vector<1x256xi32> to vector<1x256xf32>
    %c0 = arith.constant 0 : index
    %c0_4 = arith.constant 0 : index
    %25 = vector.load %arg12[%c0, %c0_4] : memref<8x7xf32, #tpu.memory_space<vmem>>, vector<8x7xf32>
    %c0_5 = arith.constant 0 : index
    %c0_6 = arith.constant 0 : index
    %c0_7 = arith.constant 0 : index
    %26 = vector.load %arg2[%c0_5, %c0_6, %c0_7] : memref<1x8x256xf32, #tpu.memory_space<vmem>>, vector<1x8x256xf32>
    %27 = vector.shape_cast %26 : vector<1x8x256xf32> to vector<8x256xf32>
    %c0_8 = arith.constant 0 : index
    %c0_9 = arith.constant 0 : index
    %c0_10 = arith.constant 0 : index
    %28 = vector.load %arg1[%c0_8, %c0_9, %c0_10] : memref<1x3x256xf32, #tpu.memory_space<vmem>>, vector<1x3x256xf32>
    %29 = vector.shape_cast %28 : vector<1x3x256xf32> to vector<3x256xf32>
    %c0_11 = arith.constant 0 : index
    %c0_12 = arith.constant 0 : index
    %c0_13 = arith.constant 0 : index
    %30 = vector.load %arg3[%c0_11, %c0_12, %c0_13] : memref<9x8x8xf32, #tpu.memory_space<vmem>>, vector<9x8x8xf32>
    %cst = arith.constant 0.000000e+00 : f32
    %31 = vector.broadcast %cst : f32 to vector<8x256xf32>
    %cst_14 = arith.constant 0.000000e+00 : f32
    %32 = vector.broadcast %cst_14 : f32 to vector<8x17xf32>
    %33 = vector.extract_strided_slice %27 {offsets = [0, 0], sizes = [8, 239], strides = [1, 1]} : vector<8x256xf32> to vector<8x239xf32>
    %34 = tpu.concatenate %32, %33 in 1 : vector<8x17xf32>, vector<8x239xf32> -> vector<8x256xf32>
    %35 = vector.broadcast %20 : vector<1x256xf32> to vector<8x256xf32>
    %36 = arith.mulf %34, %35 : vector<8x256xf32>
    %37 = vector.extract_strided_slice %30 {offsets = [0, 0, 0], sizes = [1, 8, 8], strides = [1, 1, 1]} : vector<9x8x8xf32> to vector<1x8x8xf32>
    %38 = vector.shape_cast %37 : vector<1x8x8xf32> to vector<8x8xf32>
    %cst_15 = arith.constant dense<0.000000e+00> : vector<8x256xf32>
    %39 = tpu.matmul %38, %36, %cst_15 {dimension_numbers = #tpu.dot_dimension_numbers<[1], [0], [0], [1], [0, 0, 1, 1], [], []>} : vector<8x8xf32>, vector<8x256xf32>, vector<8x256xf32> -> vector<8x256xf32>
    %40 = arith.addf %31, %39 : vector<8x256xf32>
    %cst_16 = arith.constant 0.000000e+00 : f32
    %41 = vector.broadcast %cst_16 : f32 to vector<8x16xf32>
    %42 = vector.extract_strided_slice %27 {offsets = [0, 0], sizes = [8, 240], strides = [1, 1]} : vector<8x256xf32> to vector<8x240xf32>
    %43 = tpu.concatenate %41, %42 in 1 : vector<8x16xf32>, vector<8x240xf32> -> vector<8x256xf32>
    %44 = vector.extract_strided_slice %30 {offsets = [1, 0, 0], sizes = [1, 8, 8], strides = [1, 1, 1]} : vector<9x8x8xf32> to vector<1x8x8xf32>
    %45 = vector.shape_cast %44 : vector<1x8x8xf32> to vector<8x8xf32>
    %cst_17 = arith.constant dense<0.000000e+00> : vector<8x256xf32>
    %46 = tpu.matmul %45, %43, %cst_17 {dimension_numbers = #tpu.dot_dimension_numbers<[1], [0], [0], [1], [0, 0, 1, 1], [], []>} : vector<8x8xf32>, vector<8x256xf32>, vector<8x256xf32> -> vector<8x256xf32>
    %47 = arith.addf %40, %46 : vector<8x256xf32>
    %cst_18 = arith.constant 0.000000e+00 : f32
    %48 = vector.broadcast %cst_18 : f32 to vector<8x15xf32>
    %49 = vector.extract_strided_slice %27 {offsets = [0, 0], sizes = [8, 241], strides = [1, 1]} : vector<8x256xf32> to vector<8x241xf32>
    %50 = tpu.concatenate %48, %49 in 1 : vector<8x15xf32>, vector<8x241xf32> -> vector<8x256xf32>
    %51 = vector.broadcast %24 : vector<1x256xf32> to vector<8x256xf32>
    %52 = arith.mulf %50, %51 : vector<8x256xf32>
    %53 = vector.extract_strided_slice %30 {offsets = [2, 0, 0], sizes = [1, 8, 8], strides = [1, 1, 1]} : vector<9x8x8xf32> to vector<1x8x8xf32>
    %54 = vector.shape_cast %53 : vector<1x8x8xf32> to vector<8x8xf32>
    %cst_19 = arith.constant dense<0.000000e+00> : vector<8x256xf32>
    %55 = tpu.matmul %54, %52, %cst_19 {dimension_numbers = #tpu.dot_dimension_numbers<[1], [0], [0], [1], [0, 0, 1, 1], [], []>} : vector<8x8xf32>, vector<8x256xf32>, vector<8x256xf32> -> vector<8x256xf32>
    %56 = arith.addf %47, %55 : vector<8x256xf32>
    %cst_20 = arith.constant 0.000000e+00 : f32
    %57 = vector.broadcast %cst_20 : f32 to vector<8x1xf32>
    %58 = vector.extract_strided_slice %27 {offsets = [0, 0], sizes = [8, 255], strides = [1, 1]} : vector<8x256xf32> to vector<8x255xf32>
    %59 = tpu.concatenate %57, %58 in 1 : vector<8x1xf32>, vector<8x255xf32> -> vector<8x256xf32>
    %60 = vector.broadcast %20 : vector<1x256xf32> to vector<8x256xf32>
    %61 = arith.mulf %59, %60 : vector<8x256xf32>
    %62 = vector.extract_strided_slice %30 {offsets = [3, 0, 0], sizes = [1, 8, 8], strides = [1, 1, 1]} : vector<9x8x8xf32> to vector<1x8x8xf32>
    %63 = vector.shape_cast %62 : vector<1x8x8xf32> to vector<8x8xf32>
    %cst_21 = arith.constant dense<0.000000e+00> : vector<8x256xf32>
    %64 = tpu.matmul %63, %61, %cst_21 {dimension_numbers = #tpu.dot_dimension_numbers<[1], [0], [0], [1], [0, 0, 1, 1], [], []>} : vector<8x8xf32>, vector<8x256xf32>, vector<8x256xf32> -> vector<8x256xf32>
    %65 = arith.addf %56, %64 : vector<8x256xf32>
    %66 = vector.extract_strided_slice %30 {offsets = [4, 0, 0], sizes = [1, 8, 8], strides = [1, 1, 1]} : vector<9x8x8xf32> to vector<1x8x8xf32>
    %67 = vector.shape_cast %66 : vector<1x8x8xf32> to vector<8x8xf32>
    %cst_22 = arith.constant dense<0.000000e+00> : vector<8x256xf32>
    %68 = tpu.matmul %67, %27, %cst_22 {dimension_numbers = #tpu.dot_dimension_numbers<[1], [0], [0], [1], [0, 0, 1, 1], [], []>} : vector<8x8xf32>, vector<8x256xf32>, vector<8x256xf32> -> vector<8x256xf32>
    %69 = arith.addf %65, %68 : vector<8x256xf32>
    %cst_23 = arith.constant 0.000000e+00 : f32
    %70 = vector.broadcast %cst_23 : f32 to vector<8x1xf32>
    %71 = vector.extract_strided_slice %27 {offsets = [0, 1], sizes = [8, 255], strides = [1, 1]} : vector<8x256xf32> to vector<8x255xf32>
    %72 = tpu.concatenate %71, %70 in 1 : vector<8x255xf32>, vector<8x1xf32> -> vector<8x256xf32>
    %73 = vector.broadcast %24 : vector<1x256xf32> to vector<8x256xf32>
    %74 = arith.mulf %72, %73 : vector<8x256xf32>
    %75 = vector.extract_strided_slice %30 {offsets = [5, 0, 0], sizes = [1, 8, 8], strides = [1, 1, 1]} : vector<9x8x8xf32> to vector<1x8x8xf32>
    %76 = vector.shape_cast %75 : vector<1x8x8xf32> to vector<8x8xf32>
    %cst_24 = arith.constant dense<0.000000e+00> : vector<8x256xf32>
    %77 = tpu.matmul %76, %74, %cst_24 {dimension_numbers = #tpu.dot_dimension_numbers<[1], [0], [0], [1], [0, 0, 1, 1], [], []>} : vector<8x8xf32>, vector<8x256xf32>, vector<8x256xf32> -> vector<8x256xf32>
    %78 = arith.addf %69, %77 : vector<8x256xf32>
    %cst_25 = arith.constant 0.000000e+00 : f32
    %79 = vector.broadcast %cst_25 : f32 to vector<8x15xf32>
    %80 = vector.extract_strided_slice %27 {offsets = [0, 15], sizes = [8, 241], strides = [1, 1]} : vector<8x256xf32> to vector<8x241xf32>
    %81 = tpu.concatenate %80, %79 in 1 : vector<8x241xf32>, vector<8x15xf32> -> vector<8x256xf32>
    %82 = vector.broadcast %20 : vector<1x256xf32> to vector<8x256xf32>
    %83 = arith.mulf %81, %82 : vector<8x256xf32>
    %84 = vector.extract_strided_slice %30 {offsets = [6, 0, 0], sizes = [1, 8, 8], strides = [1, 1, 1]} : vector<9x8x8xf32> to vector<1x8x8xf32>
    %85 = vector.shape_cast %84 : vector<1x8x8xf32> to vector<8x8xf32>
    %cst_26 = arith.constant dense<0.000000e+00> : vector<8x256xf32>
    %86 = tpu.matmul %85, %83, %cst_26 {dimension_numbers = #tpu.dot_dimension_numbers<[1], [0], [0], [1], [0, 0, 1, 1], [], []>} : vector<8x8xf32>, vector<8x256xf32>, vector<8x256xf32> -> vector<8x256xf32>
    %87 = arith.addf %78, %86 : vector<8x256xf32>
    %cst_27 = arith.constant 0.000000e+00 : f32
    %88 = vector.broadcast %cst_27 : f32 to vector<8x16xf32>
    %89 = vector.extract_strided_slice %27 {offsets = [0, 16], sizes = [8, 240], strides = [1, 1]} : vector<8x256xf32> to vector<8x240xf32>
    %90 = tpu.concatenate %89, %88 in 1 : vector<8x240xf32>, vector<8x16xf32> -> vector<8x256xf32>
    %91 = vector.extract_strided_slice %30 {offsets = [7, 0, 0], sizes = [1, 8, 8], strides = [1, 1, 1]} : vector<9x8x8xf32> to vector<1x8x8xf32>
    %92 = vector.shape_cast %91 : vector<1x8x8xf32> to vector<8x8xf32>
    %cst_28 = arith.constant dense<0.000000e+00> : vector<8x256xf32>
    %93 = tpu.matmul %92, %90, %cst_28 {dimension_numbers = #tpu.dot_dimension_numbers<[1], [0], [0], [1], [0, 0, 1, 1], [], []>} : vector<8x8xf32>, vector<8x256xf32>, vector<8x256xf32> -> vector<8x256xf32>
    %94 = arith.addf %87, %93 : vector<8x256xf32>
    %cst_29 = arith.constant 0.000000e+00 : f32
    %95 = vector.broadcast %cst_29 : f32 to vector<8x17xf32>
    %96 = vector.extract_strided_slice %27 {offsets = [0, 17], sizes = [8, 239], strides = [1, 1]} : vector<8x256xf32> to vector<8x239xf32>
    %97 = tpu.concatenate %96, %95 in 1 : vector<8x239xf32>, vector<8x17xf32> -> vector<8x256xf32>
    %98 = vector.broadcast %24 : vector<1x256xf32> to vector<8x256xf32>
    %99 = arith.mulf %97, %98 : vector<8x256xf32>
    %100 = vector.extract_strided_slice %30 {offsets = [8, 0, 0], sizes = [1, 8, 8], strides = [1, 1, 1]} : vector<9x8x8xf32> to vector<1x8x8xf32>
    %101 = vector.shape_cast %100 : vector<1x8x8xf32> to vector<8x8xf32>
    %cst_30 = arith.constant dense<0.000000e+00> : vector<8x256xf32>
    %102 = tpu.matmul %101, %99, %cst_30 {dimension_numbers = #tpu.dot_dimension_numbers<[1], [0], [0], [1], [0, 0, 1, 1], [], []>} : vector<8x8xf32>, vector<8x256xf32>, vector<8x256xf32> -> vector<8x256xf32>
    %103 = arith.addf %94, %102 : vector<8x256xf32>
    %104 = vector.extract_strided_slice %25 {offsets = [0, 0], sizes = [8, 1], strides = [1, 1]} : vector<8x7xf32> to vector<8x1xf32>
    %105 = vector.broadcast %104 : vector<8x1xf32> to vector<8x256xf32>
    %106 = arith.addf %103, %105 : vector<8x256xf32>
    %cst_31 = arith.constant 0.000000e+00 : f32
    %107 = vector.broadcast %cst_31 : f32 to vector<8x256xf32>
    %108 = arith.maximumf %106, %107 : vector<8x256xf32>
    %c0_32 = arith.constant 0 : index
    %c0_33 = arith.constant 0 : index
    %109 = vector.load %arg4[%c0_32, %c0_33] : memref<4x8xf32, #tpu.memory_space<vmem>>, vector<4x8xf32>
    %cst_34 = arith.constant dense<0.000000e+00> : vector<4x256xf32>
    %110 = tpu.matmul %109, %108, %cst_34 {dimension_numbers = #tpu.dot_dimension_numbers<[1], [0], [0], [1], [0, 0, 1, 1], [], []>} : vector<4x8xf32>, vector<8x256xf32>, vector<4x256xf32> -> vector<4x256xf32>
    %111 = vector.extract_strided_slice %25 {offsets = [0, 1], sizes = [4, 1], strides = [1, 1]} : vector<8x7xf32> to vector<4x1xf32>
    %112 = vector.broadcast %111 : vector<4x1xf32> to vector<4x256xf32>
    %113 = arith.addf %110, %112 : vector<4x256xf32>
    %cst_35 = arith.constant 0.000000e+00 : f32
    %114 = vector.broadcast %cst_35 : f32 to vector<4x256xf32>
    %115 = arith.maximumf %113, %114 : vector<4x256xf32>
    %c0_36 = arith.constant 0 : index
    %c0_37 = arith.constant 0 : index
    %c0_38 = arith.constant 0 : index
    %116 = vector.load %arg5[%c0_36, %c0_37, %c0_38] : memref<9x8x3xf32, #tpu.memory_space<vmem>>, vector<9x8x3xf32>
    %cst_39 = arith.constant 0.000000e+00 : f32
    %117 = vector.broadcast %cst_39 : f32 to vector<8x256xf32>
    %cst_40 = arith.constant 0.000000e+00 : f32
    %118 = vector.broadcast %cst_40 : f32 to vector<3x17xf32>
    %119 = vector.extract_strided_slice %29 {offsets = [0, 0], sizes = [3, 239], strides = [1, 1]} : vector<3x256xf32> to vector<3x239xf32>
    %120 = tpu.concatenate %118, %119 in 1 : vector<3x17xf32>, vector<3x239xf32> -> vector<3x256xf32>
    %121 = vector.broadcast %20 : vector<1x256xf32> to vector<3x256xf32>
    %122 = arith.mulf %120, %121 : vector<3x256xf32>
    %123 = vector.extract_strided_slice %116 {offsets = [0, 0, 0], sizes = [1, 8, 3], strides = [1, 1, 1]} : vector<9x8x3xf32> to vector<1x8x3xf32>
    %124 = vector.shape_cast %123 : vector<1x8x3xf32> to vector<8x3xf32>
    %cst_41 = arith.constant dense<0.000000e+00> : vector<8x256xf32>
    %125 = tpu.matmul %124, %122, %cst_41 {dimension_numbers = #tpu.dot_dimension_numbers<[1], [0], [0], [1], [0, 0, 1, 1], [], []>} : vector<8x3xf32>, vector<3x256xf32>, vector<8x256xf32> -> vector<8x256xf32>
    %126 = arith.addf %117, %125 : vector<8x256xf32>
    %cst_42 = arith.constant 0.000000e+00 : f32
    %127 = vector.broadcast %cst_42 : f32 to vector<3x16xf32>
    %128 = vector.extract_strided_slice %29 {offsets = [0, 0], sizes = [3, 240], strides = [1, 1]} : vector<3x256xf32> to vector<3x240xf32>
    %129 = tpu.concatenate %127, %128 in 1 : vector<3x16xf32>, vector<3x240xf32> -> vector<3x256xf32>
    %130 = vector.extract_strided_slice %116 {offsets = [1, 0, 0], sizes = [1, 8, 3], strides = [1, 1, 1]} : vector<9x8x3xf32> to vector<1x8x3xf32>
    %131 = vector.shape_cast %130 : vector<1x8x3xf32> to vector<8x3xf32>
    %cst_43 = arith.constant dense<0.000000e+00> : vector<8x256xf32>
    %132 = tpu.matmul %131, %129, %cst_43 {dimension_numbers = #tpu.dot_dimension_numbers<[1], [0], [0], [1], [0, 0, 1, 1], [], []>} : vector<8x3xf32>, vector<3x256xf32>, vector<8x256xf32> -> vector<8x256xf32>
    %133 = arith.addf %126, %132 : vector<8x256xf32>
    %cst_44 = arith.constant 0.000000e+00 : f32
    %134 = vector.broadcast %cst_44 : f32 to vector<3x15xf32>
    %135 = vector.extract_strided_slice %29 {offsets = [0, 0], sizes = [3, 241], strides = [1, 1]} : vector<3x256xf32> to vector<3x241xf32>
    %136 = tpu.concatenate %134, %135 in 1 : vector<3x15xf32>, vector<3x241xf32> -> vector<3x256xf32>
    %137 = vector.broadcast %24 : vector<1x256xf32> to vector<3x256xf32>
    %138 = arith.mulf %136, %137 : vector<3x256xf32>
    %139 = vector.extract_strided_slice %116 {offsets = [2, 0, 0], sizes = [1, 8, 3], strides = [1, 1, 1]} : vector<9x8x3xf32> to vector<1x8x3xf32>
    %140 = vector.shape_cast %139 : vector<1x8x3xf32> to vector<8x3xf32>
    %cst_45 = arith.constant dense<0.000000e+00> : vector<8x256xf32>
    %141 = tpu.matmul %140, %138, %cst_45 {dimension_numbers = #tpu.dot_dimension_numbers<[1], [0], [0], [1], [0, 0, 1, 1], [], []>} : vector<8x3xf32>, vector<3x256xf32>, vector<8x256xf32> -> vector<8x256xf32>
    %142 = arith.addf %133, %141 : vector<8x256xf32>
    %cst_46 = arith.constant 0.000000e+00 : f32
    %143 = vector.broadcast %cst_46 : f32 to vector<3x1xf32>
    %144 = vector.extract_strided_slice %29 {offsets = [0, 0], sizes = [3, 255], strides = [1, 1]} : vector<3x256xf32> to vector<3x255xf32>
    %145 = tpu.concatenate %143, %144 in 1 : vector<3x1xf32>, vector<3x255xf32> -> vector<3x256xf32>
    %146 = vector.broadcast %20 : vector<1x256xf32> to vector<3x256xf32>
    %147 = arith.mulf %145, %146 : vector<3x256xf32>
    %148 = vector.extract_strided_slice %116 {offsets = [3, 0, 0], sizes = [1, 8, 3], strides = [1, 1, 1]} : vector<9x8x3xf32> to vector<1x8x3xf32>
    %149 = vector.shape_cast %148 : vector<1x8x3xf32> to vector<8x3xf32>
    %cst_47 = arith.constant dense<0.000000e+00> : vector<8x256xf32>
    %150 = tpu.matmul %149, %147, %cst_47 {dimension_numbers = #tpu.dot_dimension_numbers<[1], [0], [0], [1], [0, 0, 1, 1], [], []>} : vector<8x3xf32>, vector<3x256xf32>, vector<8x256xf32> -> vector<8x256xf32>
    %151 = arith.addf %142, %150 : vector<8x256xf32>
    %152 = vector.extract_strided_slice %116 {offsets = [4, 0, 0], sizes = [1, 8, 3], strides = [1, 1, 1]} : vector<9x8x3xf32> to vector<1x8x3xf32>
    %153 = vector.shape_cast %152 : vector<1x8x3xf32> to vector<8x3xf32>
    %cst_48 = arith.constant dense<0.000000e+00> : vector<8x256xf32>
    %154 = tpu.matmul %153, %29, %cst_48 {dimension_numbers = #tpu.dot_dimension_numbers<[1], [0], [0], [1], [0, 0, 1, 1], [], []>} : vector<8x3xf32>, vector<3x256xf32>, vector<8x256xf32> -> vector<8x256xf32>
    %155 = arith.addf %151, %154 : vector<8x256xf32>
    %cst_49 = arith.constant 0.000000e+00 : f32
    %156 = vector.broadcast %cst_49 : f32 to vector<3x1xf32>
    %157 = vector.extract_strided_slice %29 {offsets = [0, 1], sizes = [3, 255], strides = [1, 1]} : vector<3x256xf32> to vector<3x255xf32>
    %158 = tpu.concatenate %157, %156 in 1 : vector<3x255xf32>, vector<3x1xf32> -> vector<3x256xf32>
    %159 = vector.broadcast %24 : vector<1x256xf32> to vector<3x256xf32>
    %160 = arith.mulf %158, %159 : vector<3x256xf32>
    %161 = vector.extract_strided_slice %116 {offsets = [5, 0, 0], sizes = [1, 8, 3], strides = [1, 1, 1]} : vector<9x8x3xf32> to vector<1x8x3xf32>
    %162 = vector.shape_cast %161 : vector<1x8x3xf32> to vector<8x3xf32>
    %cst_50 = arith.constant dense<0.000000e+00> : vector<8x256xf32>
    %163 = tpu.matmul %162, %160, %cst_50 {dimension_numbers = #tpu.dot_dimension_numbers<[1], [0], [0], [1], [0, 0, 1, 1], [], []>} : vector<8x3xf32>, vector<3x256xf32>, vector<8x256xf32> -> vector<8x256xf32>
    %164 = arith.addf %155, %163 : vector<8x256xf32>
    %cst_51 = arith.constant 0.000000e+00 : f32
    %165 = vector.broadcast %cst_51 : f32 to vector<3x15xf32>
    %166 = vector.extract_strided_slice %29 {offsets = [0, 15], sizes = [3, 241], strides = [1, 1]} : vector<3x256xf32> to vector<3x241xf32>
    %167 = tpu.concatenate %166, %165 in 1 : vector<3x241xf32>, vector<3x15xf32> -> vector<3x256xf32>
    %168 = vector.broadcast %20 : vector<1x256xf32> to vector<3x256xf32>
    %169 = arith.mulf %167, %168 : vector<3x256xf32>
    %170 = vector.extract_strided_slice %116 {offsets = [6, 0, 0], sizes = [1, 8, 3], strides = [1, 1, 1]} : vector<9x8x3xf32> to vector<1x8x3xf32>
    %171 = vector.shape_cast %170 : vector<1x8x3xf32> to vector<8x3xf32>
    %cst_52 = arith.constant dense<0.000000e+00> : vector<8x256xf32>
    %172 = tpu.matmul %171, %169, %cst_52 {dimension_numbers = #tpu.dot_dimension_numbers<[1], [0], [0], [1], [0, 0, 1, 1], [], []>} : vector<8x3xf32>, vector<3x256xf32>, vector<8x256xf32> -> vector<8x256xf32>
    %173 = arith.addf %164, %172 : vector<8x256xf32>
    %cst_53 = arith.constant 0.000000e+00 : f32
    %174 = vector.broadcast %cst_53 : f32 to vector<3x16xf32>
    %175 = vector.extract_strided_slice %29 {offsets = [0, 16], sizes = [3, 240], strides = [1, 1]} : vector<3x256xf32> to vector<3x240xf32>
    %176 = tpu.concatenate %175, %174 in 1 : vector<3x240xf32>, vector<3x16xf32> -> vector<3x256xf32>
    %177 = vector.extract_strided_slice %116 {offsets = [7, 0, 0], sizes = [1, 8, 3], strides = [1, 1, 1]} : vector<9x8x3xf32> to vector<1x8x3xf32>
    %178 = vector.shape_cast %177 : vector<1x8x3xf32> to vector<8x3xf32>
    %cst_54 = arith.constant dense<0.000000e+00> : vector<8x256xf32>
    %179 = tpu.matmul %178, %176, %cst_54 {dimension_numbers = #tpu.dot_dimension_numbers<[1], [0], [0], [1], [0, 0, 1, 1], [], []>} : vector<8x3xf32>, vector<3x256xf32>, vector<8x256xf32> -> vector<8x256xf32>
    %180 = arith.addf %173, %179 : vector<8x256xf32>
    %cst_55 = arith.constant 0.000000e+00 : f32
    %181 = vector.broadcast %cst_55 : f32 to vector<3x17xf32>
    %182 = vector.extract_strided_slice %29 {offsets = [0, 17], sizes = [3, 239], strides = [1, 1]} : vector<3x256xf32> to vector<3x239xf32>
    %183 = tpu.concatenate %182, %181 in 1 : vector<3x239xf32>, vector<3x17xf32> -> vector<3x256xf32>
    %184 = vector.broadcast %24 : vector<1x256xf32> to vector<3x256xf32>
    %185 = arith.mulf %183, %184 : vector<3x256xf32>
    %186 = vector.extract_strided_slice %116 {offsets = [8, 0, 0], sizes = [1, 8, 3], strides = [1, 1, 1]} : vector<9x8x3xf32> to vector<1x8x3xf32>
    %187 = vector.shape_cast %186 : vector<1x8x3xf32> to vector<8x3xf32>
    %cst_56 = arith.constant dense<0.000000e+00> : vector<8x256xf32>
    %188 = tpu.matmul %187, %185, %cst_56 {dimension_numbers = #tpu.dot_dimension_numbers<[1], [0], [0], [1], [0, 0, 1, 1], [], []>} : vector<8x3xf32>, vector<3x256xf32>, vector<8x256xf32> -> vector<8x256xf32>
    %189 = arith.addf %180, %188 : vector<8x256xf32>
    %190 = vector.extract_strided_slice %25 {offsets = [0, 2], sizes = [8, 1], strides = [1, 1]} : vector<8x7xf32> to vector<8x1xf32>
    %191 = vector.broadcast %190 : vector<8x1xf32> to vector<8x256xf32>
    %192 = arith.addf %189, %191 : vector<8x256xf32>
    %cst_57 = arith.constant 0.000000e+00 : f32
    %193 = vector.broadcast %cst_57 : f32 to vector<8x256xf32>
    %194 = arith.maximumf %192, %193 : vector<8x256xf32>
    %c0_58 = arith.constant 0 : index
    %c0_59 = arith.constant 0 : index
    %195 = vector.load %arg6[%c0_58, %c0_59] : memref<4x8xf32, #tpu.memory_space<vmem>>, vector<4x8xf32>
    %cst_60 = arith.constant dense<0.000000e+00> : vector<4x256xf32>
    %196 = tpu.matmul %195, %194, %cst_60 {dimension_numbers = #tpu.dot_dimension_numbers<[1], [0], [0], [1], [0, 0, 1, 1], [], []>} : vector<4x8xf32>, vector<8x256xf32>, vector<4x256xf32> -> vector<4x256xf32>
    %197 = vector.extract_strided_slice %25 {offsets = [0, 3], sizes = [4, 1], strides = [1, 1]} : vector<8x7xf32> to vector<4x1xf32>
    %198 = vector.broadcast %197 : vector<4x1xf32> to vector<4x256xf32>
    %199 = arith.addf %196, %198 : vector<4x256xf32>
    %cst_61 = arith.constant 0.000000e+00 : f32
    %200 = vector.broadcast %cst_61 : f32 to vector<4x256xf32>
    %201 = arith.maximumf %199, %200 : vector<4x256xf32>
    %c0_62 = arith.constant 0 : index
    %c0_63 = arith.constant 0 : index
    %202 = vector.load %arg10[%c0_62, %c0_63] : memref<8x8xf32, #tpu.memory_space<vmem>>, vector<8x8xf32>
    %203 = vector.extract_strided_slice %202 {offsets = [0, 0], sizes = [8, 4], strides = [1, 1]} : vector<8x8xf32> to vector<8x4xf32>
    %cst_64 = arith.constant dense<0.000000e+00> : vector<8x256xf32>
    %204 = tpu.matmul %203, %115, %cst_64 {dimension_numbers = #tpu.dot_dimension_numbers<[1], [0], [0], [1], [0, 0, 1, 1], [], []>} : vector<8x4xf32>, vector<4x256xf32>, vector<8x256xf32> -> vector<8x256xf32>
    %205 = vector.extract_strided_slice %202 {offsets = [0, 4], sizes = [8, 4], strides = [1, 1]} : vector<8x8xf32> to vector<8x4xf32>
    %cst_65 = arith.constant dense<0.000000e+00> : vector<8x256xf32>
    %206 = tpu.matmul %205, %201, %cst_65 {dimension_numbers = #tpu.dot_dimension_numbers<[1], [0], [0], [1], [0, 0, 1, 1], [], []>} : vector<8x4xf32>, vector<4x256xf32>, vector<8x256xf32> -> vector<8x256xf32>
    %207 = arith.addf %204, %206 : vector<8x256xf32>
    %cst_66 = arith.constant dense<0.000000e+00> : vector<8xf32>
    %208 = vector.multi_reduction <add>, %207, %cst_66 [1] : vector<8x256xf32> to vector<8xf32>
    %209 = vector.shape_cast %208 : vector<8xf32> to vector<8x1xf32>
    %cst_67 = arith.constant 0.000000e+00 : f32
    %210 = vector.broadcast %cst_67 : f32 to vector<8x1xf32>
    %211 = arith.maximumf %209, %210 : vector<8x1xf32>
    %c0_68 = arith.constant 0 : index
    %c0_69 = arith.constant 0 : index
    %212 = vector.load %arg11[%c0_68, %c0_69] : memref<8x8xf32, #tpu.memory_space<vmem>>, vector<8x8xf32>
    %213 = vector.shape_cast %211 : vector<8x1xf32> to vector<8x1xf32>
    %214 = vector.broadcast %213 : vector<8x1xf32> to vector<8x256xf32>
    %cst_70 = arith.constant dense<0.000000e+00> : vector<8x256xf32>
    %215 = tpu.matmul %212, %214, %cst_70 {dimension_numbers = #tpu.dot_dimension_numbers<[1], [0], [0], [1], [0, 0, 1, 1], [], []>} : vector<8x8xf32>, vector<8x256xf32>, vector<8x256xf32> -> vector<8x256xf32>
    %216 = arith.negf %215 : vector<8x256xf32>
    %217 = math.exp %216 : vector<8x256xf32>
    %cst_71 = arith.constant 1.000000e+00 : f32
    %218 = vector.broadcast %cst_71 : f32 to vector<8x256xf32>
    %219 = arith.addf %218, %217 : vector<8x256xf32>
    %220 = arith.divf %218, %219 : vector<8x256xf32>
    %221 = vector.extract_strided_slice %220 {offsets = [0, 0], sizes = [4, 256], strides = [1, 1]} : vector<8x256xf32> to vector<4x256xf32>
    %222 = arith.mulf %115, %221 : vector<4x256xf32>
    %223 = vector.extract_strided_slice %220 {offsets = [4, 0], sizes = [4, 256], strides = [1, 1]} : vector<8x256xf32> to vector<4x256xf32>
    %224 = arith.mulf %201, %223 : vector<4x256xf32>
    %c0_72 = arith.constant 0 : index
    %c0_73 = arith.constant 0 : index
    %c0_74 = arith.constant 0 : index
    %225 = vector.load %arg7[%c0_72, %c0_73, %c0_74] : memref<9x8x8xf32, #tpu.memory_space<vmem>>, vector<9x8x8xf32>
    %c0_75 = arith.constant 0 : index
    %c0_76 = arith.constant 0 : index
    %c0_77 = arith.constant 0 : index
    %226 = vector.load %arg7[%c0_75, %c0_76, %c0_77] : memref<9x8x8xf32, #tpu.memory_space<vmem>>, vector<9x8x8xf32>
    %cst_78 = arith.constant 0.000000e+00 : f32
    %227 = vector.broadcast %cst_78 : f32 to vector<8x256xf32>
    %cst_79 = arith.constant 0.000000e+00 : f32
    %228 = vector.broadcast %cst_79 : f32 to vector<4x17xf32>
    %229 = vector.extract_strided_slice %222 {offsets = [0, 0], sizes = [4, 239], strides = [1, 1]} : vector<4x256xf32> to vector<4x239xf32>
    %230 = tpu.concatenate %228, %229 in 1 : vector<4x17xf32>, vector<4x239xf32> -> vector<4x256xf32>
    %231 = vector.broadcast %20 : vector<1x256xf32> to vector<4x256xf32>
    %232 = arith.mulf %230, %231 : vector<4x256xf32>
    %233 = vector.extract_strided_slice %225 {offsets = [0, 0, 0], sizes = [1, 8, 8], strides = [1, 1, 1]} : vector<9x8x8xf32> to vector<1x8x8xf32>
    %234 = vector.shape_cast %233 : vector<1x8x8xf32> to vector<8x8xf32>
    %235 = vector.extract_strided_slice %234 {offsets = [0, 0], sizes = [8, 4], strides = [1, 1]} : vector<8x8xf32> to vector<8x4xf32>
    %cst_80 = arith.constant dense<0.000000e+00> : vector<8x256xf32>
    %236 = tpu.matmul %235, %232, %cst_80 {dimension_numbers = #tpu.dot_dimension_numbers<[1], [0], [0], [1], [0, 0, 1, 1], [], []>} : vector<8x4xf32>, vector<4x256xf32>, vector<8x256xf32> -> vector<8x256xf32>
    %237 = arith.addf %227, %236 : vector<8x256xf32>
    %cst_81 = arith.constant 0.000000e+00 : f32
    %238 = vector.broadcast %cst_81 : f32 to vector<4x17xf32>
    %239 = vector.extract_strided_slice %224 {offsets = [0, 0], sizes = [4, 239], strides = [1, 1]} : vector<4x256xf32> to vector<4x239xf32>
    %240 = tpu.concatenate %238, %239 in 1 : vector<4x17xf32>, vector<4x239xf32> -> vector<4x256xf32>
    %241 = vector.broadcast %20 : vector<1x256xf32> to vector<4x256xf32>
    %242 = arith.mulf %240, %241 : vector<4x256xf32>
    %243 = vector.extract_strided_slice %226 {offsets = [0, 0, 0], sizes = [1, 8, 8], strides = [1, 1, 1]} : vector<9x8x8xf32> to vector<1x8x8xf32>
    %244 = vector.shape_cast %243 : vector<1x8x8xf32> to vector<8x8xf32>
    %245 = vector.extract_strided_slice %244 {offsets = [0, 4], sizes = [8, 4], strides = [1, 1]} : vector<8x8xf32> to vector<8x4xf32>
    %cst_82 = arith.constant dense<0.000000e+00> : vector<8x256xf32>
    %246 = tpu.matmul %245, %242, %cst_82 {dimension_numbers = #tpu.dot_dimension_numbers<[1], [0], [0], [1], [0, 0, 1, 1], [], []>} : vector<8x4xf32>, vector<4x256xf32>, vector<8x256xf32> -> vector<8x256xf32>
    %247 = arith.addf %237, %246 : vector<8x256xf32>
    %cst_83 = arith.constant 0.000000e+00 : f32
    %248 = vector.broadcast %cst_83 : f32 to vector<4x16xf32>
    %249 = vector.extract_strided_slice %222 {offsets = [0, 0], sizes = [4, 240], strides = [1, 1]} : vector<4x256xf32> to vector<4x240xf32>
    %250 = tpu.concatenate %248, %249 in 1 : vector<4x16xf32>, vector<4x240xf32> -> vector<4x256xf32>
    %251 = vector.extract_strided_slice %225 {offsets = [1, 0, 0], sizes = [1, 8, 8], strides = [1, 1, 1]} : vector<9x8x8xf32> to vector<1x8x8xf32>
    %252 = vector.shape_cast %251 : vector<1x8x8xf32> to vector<8x8xf32>
    %253 = vector.extract_strided_slice %252 {offsets = [0, 0], sizes = [8, 4], strides = [1, 1]} : vector<8x8xf32> to vector<8x4xf32>
    %cst_84 = arith.constant dense<0.000000e+00> : vector<8x256xf32>
    %254 = tpu.matmul %253, %250, %cst_84 {dimension_numbers = #tpu.dot_dimension_numbers<[1], [0], [0], [1], [0, 0, 1, 1], [], []>} : vector<8x4xf32>, vector<4x256xf32>, vector<8x256xf32> -> vector<8x256xf32>
    %255 = arith.addf %247, %254 : vector<8x256xf32>
    %cst_85 = arith.constant 0.000000e+00 : f32
    %256 = vector.broadcast %cst_85 : f32 to vector<4x16xf32>
    %257 = vector.extract_strided_slice %224 {offsets = [0, 0], sizes = [4, 240], strides = [1, 1]} : vector<4x256xf32> to vector<4x240xf32>
    %258 = tpu.concatenate %256, %257 in 1 : vector<4x16xf32>, vector<4x240xf32> -> vector<4x256xf32>
    %259 = vector.extract_strided_slice %226 {offsets = [1, 0, 0], sizes = [1, 8, 8], strides = [1, 1, 1]} : vector<9x8x8xf32> to vector<1x8x8xf32>
    %260 = vector.shape_cast %259 : vector<1x8x8xf32> to vector<8x8xf32>
    %261 = vector.extract_strided_slice %260 {offsets = [0, 4], sizes = [8, 4], strides = [1, 1]} : vector<8x8xf32> to vector<8x4xf32>
    %cst_86 = arith.constant dense<0.000000e+00> : vector<8x256xf32>
    %262 = tpu.matmul %261, %258, %cst_86 {dimension_numbers = #tpu.dot_dimension_numbers<[1], [0], [0], [1], [0, 0, 1, 1], [], []>} : vector<8x4xf32>, vector<4x256xf32>, vector<8x256xf32> -> vector<8x256xf32>
    %263 = arith.addf %255, %262 : vector<8x256xf32>
    %cst_87 = arith.constant 0.000000e+00 : f32
    %264 = vector.broadcast %cst_87 : f32 to vector<4x15xf32>
    %265 = vector.extract_strided_slice %222 {offsets = [0, 0], sizes = [4, 241], strides = [1, 1]} : vector<4x256xf32> to vector<4x241xf32>
    %266 = tpu.concatenate %264, %265 in 1 : vector<4x15xf32>, vector<4x241xf32> -> vector<4x256xf32>
    %267 = vector.broadcast %24 : vector<1x256xf32> to vector<4x256xf32>
    %268 = arith.mulf %266, %267 : vector<4x256xf32>
    %269 = vector.extract_strided_slice %225 {offsets = [2, 0, 0], sizes = [1, 8, 8], strides = [1, 1, 1]} : vector<9x8x8xf32> to vector<1x8x8xf32>
    %270 = vector.shape_cast %269 : vector<1x8x8xf32> to vector<8x8xf32>
    %271 = vector.extract_strided_slice %270 {offsets = [0, 0], sizes = [8, 4], strides = [1, 1]} : vector<8x8xf32> to vector<8x4xf32>
    %cst_88 = arith.constant dense<0.000000e+00> : vector<8x256xf32>
    %272 = tpu.matmul %271, %268, %cst_88 {dimension_numbers = #tpu.dot_dimension_numbers<[1], [0], [0], [1], [0, 0, 1, 1], [], []>} : vector<8x4xf32>, vector<4x256xf32>, vector<8x256xf32> -> vector<8x256xf32>
    %273 = arith.addf %263, %272 : vector<8x256xf32>
    %cst_89 = arith.constant 0.000000e+00 : f32
    %274 = vector.broadcast %cst_89 : f32 to vector<4x15xf32>
    %275 = vector.extract_strided_slice %224 {offsets = [0, 0], sizes = [4, 241], strides = [1, 1]} : vector<4x256xf32> to vector<4x241xf32>
    %276 = tpu.concatenate %274, %275 in 1 : vector<4x15xf32>, vector<4x241xf32> -> vector<4x256xf32>
    %277 = vector.broadcast %24 : vector<1x256xf32> to vector<4x256xf32>
    %278 = arith.mulf %276, %277 : vector<4x256xf32>
    %279 = vector.extract_strided_slice %226 {offsets = [2, 0, 0], sizes = [1, 8, 8], strides = [1, 1, 1]} : vector<9x8x8xf32> to vector<1x8x8xf32>
    %280 = vector.shape_cast %279 : vector<1x8x8xf32> to vector<8x8xf32>
    %281 = vector.extract_strided_slice %280 {offsets = [0, 4], sizes = [8, 4], strides = [1, 1]} : vector<8x8xf32> to vector<8x4xf32>
    %cst_90 = arith.constant dense<0.000000e+00> : vector<8x256xf32>
    %282 = tpu.matmul %281, %278, %cst_90 {dimension_numbers = #tpu.dot_dimension_numbers<[1], [0], [0], [1], [0, 0, 1, 1], [], []>} : vector<8x4xf32>, vector<4x256xf32>, vector<8x256xf32> -> vector<8x256xf32>
    %283 = arith.addf %273, %282 : vector<8x256xf32>
    %cst_91 = arith.constant 0.000000e+00 : f32
    %284 = vector.broadcast %cst_91 : f32 to vector<4x1xf32>
    %285 = vector.extract_strided_slice %222 {offsets = [0, 0], sizes = [4, 255], strides = [1, 1]} : vector<4x256xf32> to vector<4x255xf32>
    %286 = tpu.concatenate %284, %285 in 1 : vector<4x1xf32>, vector<4x255xf32> -> vector<4x256xf32>
    %287 = vector.broadcast %20 : vector<1x256xf32> to vector<4x256xf32>
    %288 = arith.mulf %286, %287 : vector<4x256xf32>
    %289 = vector.extract_strided_slice %225 {offsets = [3, 0, 0], sizes = [1, 8, 8], strides = [1, 1, 1]} : vector<9x8x8xf32> to vector<1x8x8xf32>
    %290 = vector.shape_cast %289 : vector<1x8x8xf32> to vector<8x8xf32>
    %291 = vector.extract_strided_slice %290 {offsets = [0, 0], sizes = [8, 4], strides = [1, 1]} : vector<8x8xf32> to vector<8x4xf32>
    %cst_92 = arith.constant dense<0.000000e+00> : vector<8x256xf32>
    %292 = tpu.matmul %291, %288, %cst_92 {dimension_numbers = #tpu.dot_dimension_numbers<[1], [0], [0], [1], [0, 0, 1, 1], [], []>} : vector<8x4xf32>, vector<4x256xf32>, vector<8x256xf32> -> vector<8x256xf32>
    %293 = arith.addf %283, %292 : vector<8x256xf32>
    %cst_93 = arith.constant 0.000000e+00 : f32
    %294 = vector.broadcast %cst_93 : f32 to vector<4x1xf32>
    %295 = vector.extract_strided_slice %224 {offsets = [0, 0], sizes = [4, 255], strides = [1, 1]} : vector<4x256xf32> to vector<4x255xf32>
    %296 = tpu.concatenate %294, %295 in 1 : vector<4x1xf32>, vector<4x255xf32> -> vector<4x256xf32>
    %297 = vector.broadcast %20 : vector<1x256xf32> to vector<4x256xf32>
    %298 = arith.mulf %296, %297 : vector<4x256xf32>
    %299 = vector.extract_strided_slice %226 {offsets = [3, 0, 0], sizes = [1, 8, 8], strides = [1, 1, 1]} : vector<9x8x8xf32> to vector<1x8x8xf32>
    %300 = vector.shape_cast %299 : vector<1x8x8xf32> to vector<8x8xf32>
    %301 = vector.extract_strided_slice %300 {offsets = [0, 4], sizes = [8, 4], strides = [1, 1]} : vector<8x8xf32> to vector<8x4xf32>
    %cst_94 = arith.constant dense<0.000000e+00> : vector<8x256xf32>
    %302 = tpu.matmul %301, %298, %cst_94 {dimension_numbers = #tpu.dot_dimension_numbers<[1], [0], [0], [1], [0, 0, 1, 1], [], []>} : vector<8x4xf32>, vector<4x256xf32>, vector<8x256xf32> -> vector<8x256xf32>
    %303 = arith.addf %293, %302 : vector<8x256xf32>
    %304 = vector.extract_strided_slice %225 {offsets = [4, 0, 0], sizes = [1, 8, 8], strides = [1, 1, 1]} : vector<9x8x8xf32> to vector<1x8x8xf32>
    %305 = vector.shape_cast %304 : vector<1x8x8xf32> to vector<8x8xf32>
    %306 = vector.extract_strided_slice %305 {offsets = [0, 0], sizes = [8, 4], strides = [1, 1]} : vector<8x8xf32> to vector<8x4xf32>
    %cst_95 = arith.constant dense<0.000000e+00> : vector<8x256xf32>
    %307 = tpu.matmul %306, %222, %cst_95 {dimension_numbers = #tpu.dot_dimension_numbers<[1], [0], [0], [1], [0, 0, 1, 1], [], []>} : vector<8x4xf32>, vector<4x256xf32>, vector<8x256xf32> -> vector<8x256xf32>
    %308 = arith.addf %303, %307 : vector<8x256xf32>
    %309 = vector.extract_strided_slice %226 {offsets = [4, 0, 0], sizes = [1, 8, 8], strides = [1, 1, 1]} : vector<9x8x8xf32> to vector<1x8x8xf32>
    %310 = vector.shape_cast %309 : vector<1x8x8xf32> to vector<8x8xf32>
    %311 = vector.extract_strided_slice %310 {offsets = [0, 4], sizes = [8, 4], strides = [1, 1]} : vector<8x8xf32> to vector<8x4xf32>
    %cst_96 = arith.constant dense<0.000000e+00> : vector<8x256xf32>
    %312 = tpu.matmul %311, %224, %cst_96 {dimension_numbers = #tpu.dot_dimension_numbers<[1], [0], [0], [1], [0, 0, 1, 1], [], []>} : vector<8x4xf32>, vector<4x256xf32>, vector<8x256xf32> -> vector<8x256xf32>
    %313 = arith.addf %308, %312 : vector<8x256xf32>
    %cst_97 = arith.constant 0.000000e+00 : f32
    %314 = vector.broadcast %cst_97 : f32 to vector<4x1xf32>
    %315 = vector.extract_strided_slice %222 {offsets = [0, 1], sizes = [4, 255], strides = [1, 1]} : vector<4x256xf32> to vector<4x255xf32>
    %316 = tpu.concatenate %315, %314 in 1 : vector<4x255xf32>, vector<4x1xf32> -> vector<4x256xf32>
    %317 = vector.broadcast %24 : vector<1x256xf32> to vector<4x256xf32>
    %318 = arith.mulf %316, %317 : vector<4x256xf32>
    %319 = vector.extract_strided_slice %225 {offsets = [5, 0, 0], sizes = [1, 8, 8], strides = [1, 1, 1]} : vector<9x8x8xf32> to vector<1x8x8xf32>
    %320 = vector.shape_cast %319 : vector<1x8x8xf32> to vector<8x8xf32>
    %321 = vector.extract_strided_slice %320 {offsets = [0, 0], sizes = [8, 4], strides = [1, 1]} : vector<8x8xf32> to vector<8x4xf32>
    %cst_98 = arith.constant dense<0.000000e+00> : vector<8x256xf32>
    %322 = tpu.matmul %321, %318, %cst_98 {dimension_numbers = #tpu.dot_dimension_numbers<[1], [0], [0], [1], [0, 0, 1, 1], [], []>} : vector<8x4xf32>, vector<4x256xf32>, vector<8x256xf32> -> vector<8x256xf32>
    %323 = arith.addf %313, %322 : vector<8x256xf32>
    %cst_99 = arith.constant 0.000000e+00 : f32
    %324 = vector.broadcast %cst_99 : f32 to vector<4x1xf32>
    %325 = vector.extract_strided_slice %224 {offsets = [0, 1], sizes = [4, 255], strides = [1, 1]} : vector<4x256xf32> to vector<4x255xf32>
    %326 = tpu.concatenate %325, %324 in 1 : vector<4x255xf32>, vector<4x1xf32> -> vector<4x256xf32>
    %327 = vector.broadcast %24 : vector<1x256xf32> to vector<4x256xf32>
    %328 = arith.mulf %326, %327 : vector<4x256xf32>
    %329 = vector.extract_strided_slice %226 {offsets = [5, 0, 0], sizes = [1, 8, 8], strides = [1, 1, 1]} : vector<9x8x8xf32> to vector<1x8x8xf32>
    %330 = vector.shape_cast %329 : vector<1x8x8xf32> to vector<8x8xf32>
    %331 = vector.extract_strided_slice %330 {offsets = [0, 4], sizes = [8, 4], strides = [1, 1]} : vector<8x8xf32> to vector<8x4xf32>
    %cst_100 = arith.constant dense<0.000000e+00> : vector<8x256xf32>
    %332 = tpu.matmul %331, %328, %cst_100 {dimension_numbers = #tpu.dot_dimension_numbers<[1], [0], [0], [1], [0, 0, 1, 1], [], []>} : vector<8x4xf32>, vector<4x256xf32>, vector<8x256xf32> -> vector<8x256xf32>
    %333 = arith.addf %323, %332 : vector<8x256xf32>
    %cst_101 = arith.constant 0.000000e+00 : f32
    %334 = vector.broadcast %cst_101 : f32 to vector<4x15xf32>
    %335 = vector.extract_strided_slice %222 {offsets = [0, 15], sizes = [4, 241], strides = [1, 1]} : vector<4x256xf32> to vector<4x241xf32>
    %336 = tpu.concatenate %335, %334 in 1 : vector<4x241xf32>, vector<4x15xf32> -> vector<4x256xf32>
    %337 = vector.broadcast %20 : vector<1x256xf32> to vector<4x256xf32>
    %338 = arith.mulf %336, %337 : vector<4x256xf32>
    %339 = vector.extract_strided_slice %225 {offsets = [6, 0, 0], sizes = [1, 8, 8], strides = [1, 1, 1]} : vector<9x8x8xf32> to vector<1x8x8xf32>
    %340 = vector.shape_cast %339 : vector<1x8x8xf32> to vector<8x8xf32>
    %341 = vector.extract_strided_slice %340 {offsets = [0, 0], sizes = [8, 4], strides = [1, 1]} : vector<8x8xf32> to vector<8x4xf32>
    %cst_102 = arith.constant dense<0.000000e+00> : vector<8x256xf32>
    %342 = tpu.matmul %341, %338, %cst_102 {dimension_numbers = #tpu.dot_dimension_numbers<[1], [0], [0], [1], [0, 0, 1, 1], [], []>} : vector<8x4xf32>, vector<4x256xf32>, vector<8x256xf32> -> vector<8x256xf32>
    %343 = arith.addf %333, %342 : vector<8x256xf32>
    %cst_103 = arith.constant 0.000000e+00 : f32
    %344 = vector.broadcast %cst_103 : f32 to vector<4x15xf32>
    %345 = vector.extract_strided_slice %224 {offsets = [0, 15], sizes = [4, 241], strides = [1, 1]} : vector<4x256xf32> to vector<4x241xf32>
    %346 = tpu.concatenate %345, %344 in 1 : vector<4x241xf32>, vector<4x15xf32> -> vector<4x256xf32>
    %347 = vector.broadcast %20 : vector<1x256xf32> to vector<4x256xf32>
    %348 = arith.mulf %346, %347 : vector<4x256xf32>
    %349 = vector.extract_strided_slice %226 {offsets = [6, 0, 0], sizes = [1, 8, 8], strides = [1, 1, 1]} : vector<9x8x8xf32> to vector<1x8x8xf32>
    %350 = vector.shape_cast %349 : vector<1x8x8xf32> to vector<8x8xf32>
    %351 = vector.extract_strided_slice %350 {offsets = [0, 4], sizes = [8, 4], strides = [1, 1]} : vector<8x8xf32> to vector<8x4xf32>
    %cst_104 = arith.constant dense<0.000000e+00> : vector<8x256xf32>
    %352 = tpu.matmul %351, %348, %cst_104 {dimension_numbers = #tpu.dot_dimension_numbers<[1], [0], [0], [1], [0, 0, 1, 1], [], []>} : vector<8x4xf32>, vector<4x256xf32>, vector<8x256xf32> -> vector<8x256xf32>
    %353 = arith.addf %343, %352 : vector<8x256xf32>
    %cst_105 = arith.constant 0.000000e+00 : f32
    %354 = vector.broadcast %cst_105 : f32 to vector<4x16xf32>
    %355 = vector.extract_strided_slice %222 {offsets = [0, 16], sizes = [4, 240], strides = [1, 1]} : vector<4x256xf32> to vector<4x240xf32>
    %356 = tpu.concatenate %355, %354 in 1 : vector<4x240xf32>, vector<4x16xf32> -> vector<4x256xf32>
    %357 = vector.extract_strided_slice %225 {offsets = [7, 0, 0], sizes = [1, 8, 8], strides = [1, 1, 1]} : vector<9x8x8xf32> to vector<1x8x8xf32>
    %358 = vector.shape_cast %357 : vector<1x8x8xf32> to vector<8x8xf32>
    %359 = vector.extract_strided_slice %358 {offsets = [0, 0], sizes = [8, 4], strides = [1, 1]} : vector<8x8xf32> to vector<8x4xf32>
    %cst_106 = arith.constant dense<0.000000e+00> : vector<8x256xf32>
    %360 = tpu.matmul %359, %356, %cst_106 {dimension_numbers = #tpu.dot_dimension_numbers<[1], [0], [0], [1], [0, 0, 1, 1], [], []>} : vector<8x4xf32>, vector<4x256xf32>, vector<8x256xf32> -> vector<8x256xf32>
    %361 = arith.addf %353, %360 : vector<8x256xf32>
    %cst_107 = arith.constant 0.000000e+00 : f32
    %362 = vector.broadcast %cst_107 : f32 to vector<4x16xf32>
    %363 = vector.extract_strided_slice %224 {offsets = [0, 16], sizes = [4, 240], strides = [1, 1]} : vector<4x256xf32> to vector<4x240xf32>
    %364 = tpu.concatenate %363, %362 in 1 : vector<4x240xf32>, vector<4x16xf32> -> vector<4x256xf32>
    %365 = vector.extract_strided_slice %226 {offsets = [7, 0, 0], sizes = [1, 8, 8], strides = [1, 1, 1]} : vector<9x8x8xf32> to vector<1x8x8xf32>
    %366 = vector.shape_cast %365 : vector<1x8x8xf32> to vector<8x8xf32>
    %367 = vector.extract_strided_slice %366 {offsets = [0, 4], sizes = [8, 4], strides = [1, 1]} : vector<8x8xf32> to vector<8x4xf32>
    %cst_108 = arith.constant dense<0.000000e+00> : vector<8x256xf32>
    %368 = tpu.matmul %367, %364, %cst_108 {dimension_numbers = #tpu.dot_dimension_numbers<[1], [0], [0], [1], [0, 0, 1, 1], [], []>} : vector<8x4xf32>, vector<4x256xf32>, vector<8x256xf32> -> vector<8x256xf32>
    %369 = arith.addf %361, %368 : vector<8x256xf32>
    %cst_109 = arith.constant 0.000000e+00 : f32
    %370 = vector.broadcast %cst_109 : f32 to vector<4x17xf32>
    %371 = vector.extract_strided_slice %222 {offsets = [0, 17], sizes = [4, 239], strides = [1, 1]} : vector<4x256xf32> to vector<4x239xf32>
    %372 = tpu.concatenate %371, %370 in 1 : vector<4x239xf32>, vector<4x17xf32> -> vector<4x256xf32>
    %373 = vector.broadcast %24 : vector<1x256xf32> to vector<4x256xf32>
    %374 = arith.mulf %372, %373 : vector<4x256xf32>
    %375 = vector.extract_strided_slice %225 {offsets = [8, 0, 0], sizes = [1, 8, 8], strides = [1, 1, 1]} : vector<9x8x8xf32> to vector<1x8x8xf32>
    %376 = vector.shape_cast %375 : vector<1x8x8xf32> to vector<8x8xf32>
    %377 = vector.extract_strided_slice %376 {offsets = [0, 0], sizes = [8, 4], strides = [1, 1]} : vector<8x8xf32> to vector<8x4xf32>
    %cst_110 = arith.constant dense<0.000000e+00> : vector<8x256xf32>
    %378 = tpu.matmul %377, %374, %cst_110 {dimension_numbers = #tpu.dot_dimension_numbers<[1], [0], [0], [1], [0, 0, 1, 1], [], []>} : vector<8x4xf32>, vector<4x256xf32>, vector<8x256xf32> -> vector<8x256xf32>
    %379 = arith.addf %369, %378 : vector<8x256xf32>
    %cst_111 = arith.constant 0.000000e+00 : f32
    %380 = vector.broadcast %cst_111 : f32 to vector<4x17xf32>
    %381 = vector.extract_strided_slice %224 {offsets = [0, 17], sizes = [4, 239], strides = [1, 1]} : vector<4x256xf32> to vector<4x239xf32>
    %382 = tpu.concatenate %381, %380 in 1 : vector<4x239xf32>, vector<4x17xf32> -> vector<4x256xf32>
    %383 = vector.broadcast %24 : vector<1x256xf32> to vector<4x256xf32>
    %384 = arith.mulf %382, %383 : vector<4x256xf32>
    %385 = vector.extract_strided_slice %226 {offsets = [8, 0, 0], sizes = [1, 8, 8], strides = [1, 1, 1]} : vector<9x8x8xf32> to vector<1x8x8xf32>
    %386 = vector.shape_cast %385 : vector<1x8x8xf32> to vector<8x8xf32>
    %387 = vector.extract_strided_slice %386 {offsets = [0, 4], sizes = [8, 4], strides = [1, 1]} : vector<8x8xf32> to vector<8x4xf32>
    %cst_112 = arith.constant dense<0.000000e+00> : vector<8x256xf32>
    %388 = tpu.matmul %387, %384, %cst_112 {dimension_numbers = #tpu.dot_dimension_numbers<[1], [0], [0], [1], [0, 0, 1, 1], [], []>} : vector<8x4xf32>, vector<4x256xf32>, vector<8x256xf32> -> vector<8x256xf32>
    %389 = arith.addf %379, %388 : vector<8x256xf32>
    %390 = vector.extract_strided_slice %25 {offsets = [0, 4], sizes = [8, 1], strides = [1, 1]} : vector<8x7xf32> to vector<8x1xf32>
    %391 = vector.broadcast %390 : vector<8x1xf32> to vector<8x256xf32>
    %392 = arith.addf %389, %391 : vector<8x256xf32>
    %cst_113 = arith.constant 0.000000e+00 : f32
    %393 = vector.broadcast %cst_113 : f32 to vector<8x256xf32>
    %394 = arith.maximumf %392, %393 : vector<8x256xf32>
    %c0_114 = arith.constant 0 : index
    %c0_115 = arith.constant 0 : index
    %395 = vector.load %arg8[%c0_114, %c0_115] : memref<8x8xf32, #tpu.memory_space<vmem>>, vector<8x8xf32>
    %cst_116 = arith.constant dense<0.000000e+00> : vector<8x256xf32>
    %396 = tpu.matmul %395, %394, %cst_116 {dimension_numbers = #tpu.dot_dimension_numbers<[1], [0], [0], [1], [0, 0, 1, 1], [], []>} : vector<8x8xf32>, vector<8x256xf32>, vector<8x256xf32> -> vector<8x256xf32>
    %397 = vector.extract_strided_slice %25 {offsets = [0, 5], sizes = [8, 1], strides = [1, 1]} : vector<8x7xf32> to vector<8x1xf32>
    %398 = vector.broadcast %397 : vector<8x1xf32> to vector<8x256xf32>
    %399 = arith.addf %396, %398 : vector<8x256xf32>
    %cst_117 = arith.constant 0.000000e+00 : f32
    %400 = vector.broadcast %cst_117 : f32 to vector<8x256xf32>
    %401 = arith.maximumf %399, %400 : vector<8x256xf32>
    %c0_118 = arith.constant 0 : index
    %c0_119 = arith.constant 0 : index
    %402 = vector.load %arg9[%c0_118, %c0_119] : memref<4x8xf32, #tpu.memory_space<vmem>>, vector<4x8xf32>
    %403 = arith.addf %401, %27 : vector<8x256xf32>
    %cst_120 = arith.constant dense<0.000000e+00> : vector<4x256xf32>
    %404 = tpu.matmul %402, %403, %cst_120 {dimension_numbers = #tpu.dot_dimension_numbers<[1], [0], [0], [1], [0, 0, 1, 1], [], []>} : vector<4x8xf32>, vector<8x256xf32>, vector<4x256xf32> -> vector<4x256xf32>
    %405 = vector.extract_strided_slice %25 {offsets = [0, 6], sizes = [4, 1], strides = [1, 1]} : vector<8x7xf32> to vector<4x1xf32>
    %406 = vector.broadcast %405 : vector<4x1xf32> to vector<4x256xf32>
    %407 = arith.addf %404, %406 : vector<4x256xf32>
    %c0_121 = arith.constant 0 : index
    %c0_122 = arith.constant 0 : index
    %c0_123 = arith.constant 0 : index
    %408 = vector.load %arg13[%c0_121, %c0_122, %c0_123] : memref<1x4x256xf32, #tpu.memory_space<vmem>>, vector<1x4x256xf32>
    %409 = vector.shape_cast %408 : vector<1x4x256xf32> to vector<4x256xf32>
    %410 = vector.shape_cast %407 : vector<4x256xf32> to vector<1x4x256xf32>
    tpu.vector_store %arg13[%c0_121, %c0_122, %c0_123], %410 {strides = array<i32>} : memref<1x4x256xf32, #tpu.memory_space<vmem>>, vector<1x4x256xf32>,
    return
  }
  func.func @transform_0(%arg0: i32) -> (i32, i32, i32) {
    %c0_i32 = arith.constant 0 : i32
    %c0_i32_0 = arith.constant 0 : i32
    %c0_i32_1 = arith.constant 0 : i32
    return %arg0, %c0_i32, %c0_i32_0 : i32, i32, i32
  }
  func.func @transform_1(%arg0: i32) -> (i32, i32, i32) {
    %c0_i32 = arith.constant 0 : i32
    %c0_i32_0 = arith.constant 0 : i32
    %c0_i32_1 = arith.constant 0 : i32
    return %arg0, %c0_i32, %c0_i32_0 : i32, i32, i32
  }
  func.func @transform_2(%arg0: i32) -> (i32, i32, i32) {
    %c0_i32 = arith.constant 0 : i32
    %c0_i32_0 = arith.constant 0 : i32
    %c0_i32_1 = arith.constant 0 : i32
    %c0_i32_2 = arith.constant 0 : i32
    return %c0_i32, %c0_i32_0, %c0_i32_1 : i32, i32, i32
  }
  func.func @transform_3(%arg0: i32) -> (i32, i32) {
    %c0_i32 = arith.constant 0 : i32
    %c0_i32_0 = arith.constant 0 : i32
    %c0_i32_1 = arith.constant 0 : i32
    return %c0_i32, %c0_i32_0 : i32, i32
  }
  func.func @transform_4(%arg0: i32) -> (i32, i32, i32) {
    %c0_i32 = arith.constant 0 : i32
    %c0_i32_0 = arith.constant 0 : i32
    %c0_i32_1 = arith.constant 0 : i32
    %c0_i32_2 = arith.constant 0 : i32
    return %c0_i32, %c0_i32_0, %c0_i32_1 : i32, i32, i32
  }
  func.func @transform_5(%arg0: i32) -> (i32, i32) {
    %c0_i32 = arith.constant 0 : i32
    %c0_i32_0 = arith.constant 0 : i32
    %c0_i32_1 = arith.constant 0 : i32
    return %c0_i32, %c0_i32_0 : i32, i32
  }
  func.func @transform_6(%arg0: i32) -> (i32, i32, i32) {
    %c0_i32 = arith.constant 0 : i32
    %c0_i32_0 = arith.constant 0 : i32
    %c0_i32_1 = arith.constant 0 : i32
    %c0_i32_2 = arith.constant 0 : i32
    return %c0_i32, %c0_i32_0, %c0_i32_1 : i32, i32, i32
  }
  func.func @transform_7(%arg0: i32) -> (i32, i32) {
    %c0_i32 = arith.constant 0 : i32
    %c0_i32_0 = arith.constant 0 : i32
    %c0_i32_1 = arith.constant 0 : i32
    return %c0_i32, %c0_i32_0 : i32, i32
  }
  func.func @transform_8(%arg0: i32) -> (i32, i32) {
    %c0_i32 = arith.constant 0 : i32
    %c0_i32_0 = arith.constant 0 : i32
    %c0_i32_1 = arith.constant 0 : i32
    return %c0_i32, %c0_i32_0 : i32, i32
  }
  func.func @transform_9(%arg0: i32) -> (i32, i32) {
    %c0_i32 = arith.constant 0 : i32
    %c0_i32_0 = arith.constant 0 : i32
    %c0_i32_1 = arith.constant 0 : i32
    return %c0_i32, %c0_i32_0 : i32, i32
  }
  func.func @transform_10(%arg0: i32) -> (i32, i32) {
    %c0_i32 = arith.constant 0 : i32
    %c0_i32_0 = arith.constant 0 : i32
    %c0_i32_1 = arith.constant 0 : i32
    return %c0_i32, %c0_i32_0 : i32, i32
  }
  func.func @transform_11(%arg0: i32) -> (i32, i32) {
    %c0_i32 = arith.constant 0 : i32
    %c0_i32_0 = arith.constant 0 : i32
    %c0_i32_1 = arith.constant 0 : i32
    return %c0_i32, %c0_i32_0 : i32, i32
  }
  func.func @transform_12(%arg0: i32) -> (i32, i32, i32) {
    %c0_i32 = arith.constant 0 : i32
    %c0_i32_0 = arith.constant 0 : i32
    %c0_i32_1 = arith.constant 0 : i32
    return %arg0, %c0_i32, %c0_i32_0 : i32, i32, i32
  }
}

</mosaic_0001>

<bundles_post_ra>
// kernel: tpu_custom_call.1
= control target key start
LH: loop header
LB: loop body
LE: loop exit
PB: predicated region body
PF: predicated region fallthrough
CT: control target
= control target key end

     0   :  { %s5517_s0 = inlined_call_operand.vmem [shape: f32[2,3,256], index: 0, kind: input, shape index: {}]   ;;  %s5518_s1 = inlined_call_operand.vmem [shape: f32[2,8,256], index: 1, kind: input, shape index: {}]   ;;  %s5519_s2 = inlined_call_operand.vmem [shape: f32[9,8,8], index: 2, kind: input, shape index: {}]   ;;  %s5520_s3 = inlined_call_operand.vmem [shape: f32[4,8], index: 3, kind: input, shape index: {}]   ;;  %s5521_s4 = inlined_call_operand.vmem [shape: f32[9,8,3], index: 4, kind: input, shape index: {}]   ;;  %s5522_s5 = inlined_call_operand.vmem [shape: f32[4,8], index: 5, kind: input, shape index: {}]   ;;  %s5523_s6 = inlined_call_operand.vmem [shape: f32[9,8,8], index: 6, kind: input, shape index: {}]   ;;  %s5524_s7 = inlined_call_operand.vmem [shape: f32[8,8], index: 7, kind: input, shape index: {}]   ;;  %s5525_s8 = inlined_call_operand.vmem [shape: f32[4,8], index: 8, kind: input, shape index: {}]   ;;  %s5526_s9 = inlined_call_operand.vmem [shape: f32[8,8], index: 9, kind: input, shape index: {}]   ;;  %s5527_s10 = inlined_call_operand.vmem [shape: f32[8,8], index: 10, kind: input, shape index: {}]   ;;  %s5528_s11 = inlined_call_operand.vmem [shape: f32[8,7], index: 11, kind: input, shape index: {}]   ;;  %s5529_s12 = inlined_call_operand.hbm [shape: f32[2,4,256], index: 12, kind: output, shape index: {}]  }
   0x1   :  { %5546 = sst [smem:[#allocation5_spill]] %s5517_s0 }
   0x2   :  { %5547 = sst [smem:[#allocation6_spill]] %s5518_s1 }
   0x3   :  { %5548 = sst [smem:[#allocation7_spill]] %s5519_s2 }
   0x4   :  { %5549 = sst [smem:[#allocation8_spill]] %s5520_s3 }
   0x5   :  { %5550 = sst [smem:[#allocation9_spill]] %s5521_s4 }
   0x6   :  { %5551 = sst [smem:[#allocation10_spill]] %s5522_s5 }
   0x7   :  { %17 = vsyncpa [#allocation3], 0 }
   0x8   :  { %19 = vsyncpa [#allocation3 + $0x1], 0  ;;  %s4755_s21 = smov 0   ;;  %s4757_s22 = smov 0  }
   0x9   :  { %s4759_s23 = smov 0   ;;  %s4761_s24 = smov 0  }
   0xa LB: > { %s4776_s25 = sadd.s32 4294967295, %s4670_s24   ;;  %s4407_s26 = sadd.s32 4294967294, %s4670_s24   ;;  %s4670_s24 = sphi %s4761_s24, %s5571_s24   ;;  %s4666_s23 = sphi %s4759_s23, %s5570_s23   ;;  %s4662_s22 = sphi %s4757_s22, %s5569_s22   ;;  %s4658_s21 = sphi %s4755_s21, %s5568_s21  }
   0xb   : > { %s4780_s27 = sadd.s32 1, %s4670_s24   ;;  %s294_s28 = sadd.s32 1, %s4666_s23 }
   0xc   : > { %s291_s29 = ssub.s32 %s4670_s24, %s4780_s27  ;;  %p304_p0 = scmp.ne.s32.totalorder %s4666_s23, %s4662_s22 }
   0xd   : > { %p292_p1 = scmp.eq.s32.totalorder %s291_s29, 0  ;;  %p305_p2 = scmp.eq.s32.totalorder %s4776_s25, 1 }
   0xe   : > { %p310_p3 = scmp.ne.s32.totalorder %s4662_s22, %s4658_s21  ;;  %p311_p4 = scmp.eq.s32.totalorder %s4407_s26, 1 }
   0xf   : > { %s4791_s30 = scalar_select %p292_p1, %s4666_s23, %s294_s28  }
  0x10   : > { %p4793_p5 = por %p305_p2, %p304_p0  ;;  %p4797_p6 = por %p311_p4, %p310_p3 }
  0x11   : > { %p4410_p7 = scmp.ge.s32.totalorder %s4670_s24, 1  ;;  %p375_p8 = scmp.lt.s32.totalorder %s4670_s24, 3 }
  0x13   : > { %p376_p9 = pnand %p4410_p7, %p375_p8 }
  0x14   : > { %p422_p10 = scmp.lt.s32.totalorder (!%p376_p9), %s4776_s25, 1  ;;  %s5554_s1 = sld [smem:[#allocation6_spill]] (!%p376_p9) }
  0x15   : > { %379 = sbr.rel (%p376_p9) target bundleno = 2192 (0x890), region = 68  ;;  %s5534_s20 = smov (!%p376_p9), 16  }
  0x16   : > { %s5538_s26 = smov (!%p376_p9), 17   ;;  %s5530_s28 = smov (!%p376_p9), 15  }
  0x17   : > { %s5532_s29 = smov (!%p376_p9), 1   ;;  %s5540_s17 = smov (!%p376_p9), 113  }
  0x18   : > { %s5555_s0 = sld [smem:[#allocation5_spill]] (!%p376_p9) }
  0x19   : > { %s5562_s2 = sld [smem:[#allocation7_spill]] (!%p376_p9) }
  0x1a   : > { %v4672_v0 = vmov 0.0   ;;  %s4807_s15 = scalar_select %p422_p10, %s4776_s25, 1  ;;  %v4679_v3 = vmov 0   ;;  %v4860_v4 = vld [vmem:[%s5528_s11] sm:$0xff]  ;;  %v432_v7 = vlaneseq  ;;  %vm490_vm1 = vcmask 138240  }
  0x1b   : > { %574 = vmatprep.mubr.f32.mxu0 %v4672_v0  ;;  %648 = vmatprep.mubr.f32.mxu1 %v4672_v0  ;;  %vm501_vm2 = vcmask 130048   ;;  %vm506_vm7 = vcmask 64512   ;;  %vm659_vm8 = vcmask 121856   ;;  %vm746_vm9 = vcmask 7168   ;;  %s5563_s4 = sld [smem:[#allocation9_spill]] }
  0x1c   : > { %s4532_s16 = sshll.u32 %s4807_s15, 4  ;;  %4590 = vset.pattern.permute.xlu0 %v4679_v3  ;;  %s4531_s18 = sshll.u32 %s4807_s15, 3  ;;  %v433_v8 = vand.u32 127, %v432_v7  ;;  %vm4420_vm4 = vmneg %vm501_vm2  ;;  %vm909_vm10 = vcmask 1039360   ;;  %vm996_vm11 = vcmask 924672   ;;  %vm1168_vm12 = vcmask 908288  }
  0x1d   : > { %s4813_s19 = scalar_lea.vmem %s5554_s1, %s4532_s16  ;;  %s5536_s16 = smov 127   ;;  %vm1083_vm13 = vcmask 916480   ;;  %vm1373_vm14 = vcmask 1042432   ;;  %vm1369_vm15 = vcmask 23552  }
  0x1e   : > { %v4816_v1 = vld [vmem:[%s4813_s19] sm:$0xff]  ;;  %v4823_v2 = vld [vmem:[%s4813_s19 + $0x8] sm:$0xff]  ;;  %s5556_s1 = smov 17   ;;  %v434_v9 = vadd.s32 128, %v433_v8  ;;  %v439_v11 = vand.u32 15, %v433_v8  ;;  %s5564_s3 = sld [smem:[#allocation8_spill]] }
  0x1f   : > { %497 = vrot.lane.b32.xlu1 %v4816_v1, %s5534_s20  ;;  %486 = vrot.lane.b32.xlu0 %v4816_v1, %s5538_s26  ;;  %v476_v21 = vld [vmem:[%s5562_s2 + $0x8] sm:$0xff]  ;;  %v475_v26 = vld [vmem:[%s5562_s2] sm:$0xff]  ;;  %s5565_s5 = sld [smem:[#allocation10_spill]]  ;;  %s5567_s15 = smov 111  }
  0x20   : > { %v446_v10 = vand.u32 15, %v434_v9  ;;  %vm459_vm3 = vcmp.ge.s32.totalorder %v439_v11, 1  ;;  %vm465_vm5 = vcmp.le.s32.totalorder %v439_v11, 14  ;;  %v477_v33 = vld [vmem:[%s5562_s2 + $0x10] sm:$0xff]  ;;  %v478_v40 = vld [vmem:[%s5562_s2 + $0x18] sm:$0xff]  ;;  %v479_v41 = vld [vmem:[%s5562_s2 + $0x20] sm:$0xff] }
  0x21   : > { %v4907_v18 = vsel %vm459_vm3, 1.0, %v4672_v0  ;;  %v4916_v23 = vsel %vm465_vm5, 1.0, %v4672_v0  ;;  %v480_v48 = vld [vmem:[%s5562_s2 + $0x28] sm:$0xff]  ;;  %v481_v55 = vld [vmem:[%s5562_s2 + $0x30] sm:$0xff]  ;;  %v482_v62 = vld [vmem:[%s5562_s2 + $0x38] sm:$0xff]  ;;  %vm2251_vm3 = vcmask 31744  }
  0x22   : > { %vm460_vm0 = vcmp.ge.s32.totalorder %v446_v10, 1  ;;  %vm466_vm6 = vcmp.le.s32.totalorder %v446_v10, 14  ;;  %v483_v3 = vld [vmem:[%s5562_s2 + $0x40] sm:$0xff]  ;;  %s4685_s2 = smov 124  }
  0x23   : > { %499 = vrot.lane.b32.xlu1 %v4823_v2, %s5534_s20  ;;  %488 = vrot.lane.b32.xlu0 %v4823_v2, %s5538_s26  ;;  %s426_s26 = scalar_lea.vmem %s5555_s0, %s4531_s18  ;;  %s5557_s20 = smov 16   ;;  %v4902_v14 = vsel %vm460_vm0, 1.0, %v4672_v0  ;;  %v4919_v24 = vsel %vm466_vm6, 1.0, %v4672_v0  ;;  %vm2254_vm0 = vcmask 1043456  }
  0x24   : > { %v4862_v5 = vld [vmem:[%s426_s26] sm:$0x77]  ;;  %s5558_s26 = smov 15   ;;  %s5561_s18 = smov 113  }
  0x25   : > { %v4869_v6 = vcombine.high %v4862_v5, %v4862_v5 }
  0x27   : > { %657 = vrot.lane.b32.xlu1 %v4823_v2, %s5530_s28  ;;  %655 = vrot.lane.b32.xlu0 %v4816_v1, %s5530_s28  ;;  %s5544_s28 = smov 112  }
  0x2b   : > { %744 = vrot.lane.b32.xlu1 %v4823_v2, %s5532_s29  ;;  %742 = vrot.lane.b32.xlu0 %v4816_v1, %s5532_s29  ;;  %s5542_s29 = smov 111  }
  0x2f   : > { %905 = vrot.lane.b32.xlu1 %v4816_v1, %s5536_s16  ;;  %907 = vrot.lane.b32.xlu0 %v4823_v2, %s5536_s16  ;;  %s5559_s16 = smov 1  }
  0x33   : > { %992 = vrot.lane.b32.xlu1 %v4816_v1, %s5540_s17  ;;  %994 = vrot.lane.b32.xlu0 %v4823_v2, %s5540_s17  ;;  %s5560_s17 = smov 127  }
  0x37   : > { %1079 = vrot.lane.b32.xlu1 %v4816_v1, %s5544_s28  ;;  %1166 = vrot.lane.b32.xlu0 %v4823_v2, %s5542_s29 }
  0x3b   : > { %1164 = vrot.lane.b32.xlu1 %v4816_v1, %s5542_s29  ;;  %1081 = vrot.lane.b32.xlu0 %v4823_v2, %s5544_s28 }
  0x3f   : > { %1253 = vperm.xlu0 %4590, %v4860_v4   ;;  %1352 = vrot.lane.b32.xlu1 %v4862_v5, %s5556_s1 }
  0x43   : > { %1354 = vrot.lane.b32.xlu1 %v4869_v6, %s5556_s1  ;;  %1362 = vrot.lane.b32.xlu0 %v4862_v5, %s5557_s20 }
  0x47   : > { %1364 = vrot.lane.b32.xlu1 %v4869_v6, %s5557_s20  ;;  %1530 = vrot.lane.b32.xlu0 %v4862_v5, %s5558_s26 }
  0x4b   : > { %1532 = vrot.lane.b32.xlu1 %v4869_v6, %s5558_s26  ;;  %1622 = vrot.lane.b32.xlu0 %v4862_v5, %s5559_s16 }
  0x4f   : > { %1624 = vrot.lane.b32.xlu1 %v4869_v6, %s5559_s16  ;;  %1796 = vrot.lane.b32.xlu0 %v4869_v6, %s5560_s17 }
  0x53   : > { %1794 = vrot.lane.b32.xlu1 %v4862_v5, %s5560_s17  ;;  %1888 = vrot.lane.b32.xlu0 %v4869_v6, %s5561_s18 }
  0x57   : > { %1886 = vrot.lane.b32.xlu1 %v4862_v5, %s5561_s18  ;;  %1980 = vrot.lane.b32.xlu0 %v4869_v6, %s5544_s28 }
  0x5b   : > { %2068 = vrot.lane.b32.xlu1 %v4869_v6, %s5542_s29  ;;  %1978 = vrot.lane.b32.xlu0 %v4862_v5, %s5544_s28 }
  0x5f   : > { %2066 = vrot.lane.b32.xlu1 %v4862_v5, %s5542_s29 }
  0x91   : > { %v498_v12 = vpop.permute.xlu1 %497  ;;  %v487_v13 = vpop.permute.xlu0 %486 }
  0x92   : > { %v494_v15 = vsel %vm490_vm1, 0.0, %v487_v13 }
  0x93   : > { %v495_v25 = vmul.f32 %v4907_v18, %v494_v15 }
  0x95   : > { %v500_v16 = vpop.permute.xlu1 %499  ;;  %v489_v17 = vpop.permute.xlu0 %488 }
  0x96   : > { %v502_v19 = vsel %vm501_vm2, %v498_v12, %v500_v16  ;;  %v491_v20 = vsel %vm490_vm1, %v487_v13, %v489_v17 }
  0x97   : > { %540 = vmatprep.subr.mxu0 %v502_v19  ;;  %v496_v22 = vmul.f32 %v4902_v14, %v491_v20 }
  0x98   : > { %4421 = vmatpush1.msk.msra.mxu0 %vm4420_vm4, %v498_v12 }
  0x99   : > { %v658_v27 = vpop.permute.xlu1 %657  ;;  %614 = vmatprep.subr.mxu1 %v496_v22  ;;  %v656_v28 = vpop.permute.xlu0 %655  ;;  %4422 = vmatmul.mubr.msk.f32.vlgmr.msra.gmra.mxu0 %vm506_vm7, %v476_v21 }
  0x9a   : > { %v660_v29 = vsel %vm659_vm8, %v656_v28, %v658_v27  ;;  %v663_v30 = vsel %vm659_vm8, 0.0, %v656_v28  ;;  %615 = vmatpush1.msra.mxu1 %v495_v25  ;;  %733 = vmatprep.mubr.f32.mxu0 %v4672_v0  ;;  %v1342_v28 = vld [vmem:[%s5563_s4 + $0x8] sm:$0xff] }
  0x9b   : > { %v664_v31 = vmul.f32 %v4916_v23, %v663_v30  ;;  %v665_v32 = vmul.f32 %v4919_v24, %v660_v29  ;;  %4423 = vmatmul.mubr.msk.f32.vlgmr.msra.gmra.mxu1 %vm506_vm7, %v475_v26 }
  0x9c   : > { %820 = vmatprep.mubr.f32.mxu1 %v4672_v0 }
  0x9d   : > { %v745_v34 = vpop.permute.xlu1 %744  ;;  %699 = vmatprep.subr.mxu0 %v665_v32  ;;  %v743_v35 = vpop.permute.xlu0 %742 }
  0x9e   : > { %v747_v36 = vsel %vm746_vm9, %v743_v35, %v745_v34  ;;  %v750_v37 = vsel %vm746_vm9, 0.0, %v743_v35  ;;  %700 = vmatpush1.msra.mxu0 %v664_v31 }
  0x9f   : > { %v751_v38 = vmul.f32 %v4907_v18, %v750_v37  ;;  %v752_v39 = vmul.f32 %v4902_v14, %v747_v36  ;;  %4424 = vmatmul.mubr.msk.f32.vlgmr.msra.gmra.mxu0 %vm506_vm7, %v477_v33  ;;  %862 = vmatprep.subr.mxu0 %v4823_v2  ;;  %v1343_v37 = vld [vmem:[%s5563_s4 + $0x10] sm:$0xff] }
  0xa0   : > { %863 = vmatpush1.msra.mxu0 %v4816_v1  ;;  %896 = vmatprep.mubr.f32.mxu0 %v4672_v0 }
  0xa1   : > { %v906_v42 = vpop.permute.xlu1 %905  ;;  %786 = vmatprep.subr.mxu1 %v752_v39  ;;  %v908_v43 = vpop.permute.xlu0 %907 }
  0xa2   : > { %v910_v44 = vsel %vm909_vm10, %v906_v42, %v908_v43  ;;  %v913_v45 = vsel %vm909_vm10, %v908_v43, 0.0  ;;  %787 = vmatpush1.msra.mxu1 %v751_v38 }
  0xa3   : > { %v914_v46 = vmul.f32 %v4916_v23, %v910_v44  ;;  %v915_v47 = vmul.f32 %v4919_v24, %v913_v45  ;;  %4425 = vmatmul.mubr.msk.f32.vlgmr.msra.gmra.mxu1 %vm506_vm7, %v478_v40  ;;  %4426 = vmatmul.mubr.msk.f32.vlgmr.msra.gmra.mxu0 %vm506_vm7, %v479_v41  ;;  %v1345_v41 = vld [vmem:[%s5563_s4 + $0x20] sm:$0xff]  ;;  %v1347_v44 = vld [vmem:[%s5563_s4 + $0x30] sm:$0xff] }
  0xa4   : > { %983 = vmatprep.mubr.f32.mxu1 %v4672_v0  ;;  %1070 = vmatprep.mubr.f32.mxu0 %v4672_v0  ;;  %v1349_v45 = vld [vmem:[%s5563_s4 + $0x40] sm:$0xff] }
  0xa5   : > { %v993_v49 = vpop.permute.xlu1 %992  ;;  %949 = vmatprep.subr.mxu1 %v915_v47  ;;  %v995_v50 = vpop.permute.xlu0 %994  ;;  %v4683_v47 = vmov 2  }
  0xa6   : > { %v997_v51 = vsel %vm996_vm11, %v993_v49, %v995_v50  ;;  %v1000_v52 = vsel %vm996_vm11, %v995_v50, 0.0  ;;  %950 = vmatpush1.msra.mxu1 %v914_v46  ;;  %v4682_v46 = vmov 1   ;;  %4591 = vset.pattern.permute.xlu0 %v4683_v47  ;;  %v4684_v47 = vmov 3  }
  0xa7   : > { %v1001_v53 = vmul.f32 %v4907_v18, %v997_v51  ;;  %v1002_v54 = vmul.f32 %v4902_v14, %v1000_v52  ;;  %4427 = vmatmul.mubr.msk.f32.vlgmr.msra.gmra.mxu1 %vm506_vm7, %v480_v48  ;;  %4592 = vset.pattern.permute.xlu1 %v4682_v46  ;;  %v2247_v46 = vld [vmem:[%s5526_s9] sm:$0xff] }
  0xa8   : > { %1155 = vmatprep.mubr.f32.mxu1 %v4672_v0  ;;  %1262 = vperm.xlu1 %4592, %v4860_v4  }
  0xa9   : > { %v1080_v56 = vpop.permute.xlu1 %1079  ;;  %1036 = vmatprep.subr.mxu0 %v1002_v54  ;;  %v1167_v57 = vpop.permute.xlu0 %1166  ;;  %2159 = vperm.xlu0 %4591, %v4860_v4  }
  0xaa   : > { %v1172_v58 = vsel %vm1168_vm12, %v1167_v57, 0.0  ;;  %1037 = vmatpush1.msra.mxu0 %v1001_v53 }
  0xab   : > { %v1174_v59 = vmul.f32 %v4919_v24, %v1172_v58  ;;  %4428 = vmatmul.mubr.msk.f32.vlgmr.msra.gmra.mxu0 %vm506_vm7, %v481_v55 }
  0xac   : > { %1242 = vmatprep.mubr.f32.mxu0 %v4672_v0  ;;  %4593 = vset.pattern.permute.xlu1 %v4684_v47 }
  0xad   : > { %v1165_v60 = vpop.permute.xlu1 %1164  ;;  %1208 = vmatprep.subr.mxu0 %v1174_v59  ;;  %v1082_v61 = vpop.permute.xlu0 %1081  ;;  %2249 = vrot.lane.b32.xlu0 %v2247_v46, %s4685_s2 }
  0xae   : > { %v1169_v63 = vsel %vm1168_vm12, %v1165_v60, %v1167_v57  ;;  %v1084_v1 = vsel %vm1083_vm13, %v1080_v56, %v1082_v61  ;;  %4429 = vmatprep.subr.msk.mxu1 %vm1083_vm13, %v1082_v61  ;;  %2168 = vperm.xlu1 %4593, %v4860_v4  }
  0xaf   : > { %v1173_v2 = vmul.f32 %v4916_v23, %v1169_v63  ;;  %1122 = vmatpush1.msra.mxu1 %v1084_v1 }
  0xb0   : > { %4430 = vmatmul.mubr.msk.f32.vlgmr.msra.gmra.mxu1 %vm506_vm7, %v482_v62 }
  0xb1   : > { %1209 = vmatpush1.msra.mxu0 %v1173_v2  ;;  %1332 = vmatprep.mubr.f32.mxu1 %v4672_v0  ;;  %v4988_v7 = vpop.permute.xlu1 %1352 }
  0xb2   : > { %4431 = vmatmul.mubr.msk.f32.vlgmr.msra.gmra.mxu0 %vm506_vm7, %v483_v3 }
  0xb3   : > { %1443 = vmatprep.mubr.f32.mxu0 %v4672_v0 }
  0xb5   : > { %v1355_v9 = vpop.permute.xlu1 %1354 }
  0xb6   : > { %v4994_v10 = vsel %vm490_vm1, %v4988_v7, %v1355_v9 }
  0xb9   : > { %v1365_v12 = vpop.permute.xlu1 %1364 }
  0xba   : > { %v4990_v8 = vpop.permute.xlu0 %1253 }
  0xbd   : > { %v1533_v17 = vpop.permute.xlu1 %1532 }
  0xbe   : > { %v1363_v11 = vpop.permute.xlu0 %1362 }
  0xbf   : > { %v1366_v13 = vsel %vm501_vm2, %v1363_v11, %v1365_v12  ;;  %v1368_v15 = vsel %vm501_vm2, 0.0, %v1363_v11 }
  0xc0   : > { %4433 = vmatprep.subr.msk.mxu0 %vm1373_vm14, %v1366_v13 }
  0xc1   : > { %4434 = vmatpush1.msk.msra.mxu0 %vm1373_vm14, %v1368_v15  ;;  %v1625_v21 = vpop.permute.xlu1 %1624 }
  0xc2   : > { %v1531_v16 = vpop.permute.xlu0 %1530  ;;  %4435 = vmatmul.mubr.msk.f32.vlgmr.msra.gmra.mxu0 %vm1369_vm15, %v1342_v28 }
  0xc3   : > { %v1534_v19 = vsel %vm659_vm8, %v1531_v16, %v1533_v17  ;;  %v1537_v22 = vsel %vm659_vm8, 0.0, %v1531_v16  ;;  %1613 = vmatprep.mubr.f32.mxu0 %v4672_v0 }
  0xc4   : > { %v1539_v25 = vmul.f32 %v4919_v24, %v1534_v19  ;;  %v1538_v26 = vmul.f32 %v4916_v23, %v1537_v22 }
  0xc5   : > { %v1795_v30 = vpop.permute.xlu1 %1794 }
  0xc6   : > { %v5001_v20 = vpop.permute.xlu0 %1622  ;;  %4439 = vmatprep.subr.msk.mxu0 %vm1373_vm14, %v1539_v25 }
  0xc7   : > { %v5008_v27 = vsel %vm746_vm9, %v5001_v20, %v1625_v21  ;;  %4440 = vmatpush1.msk.msra.mxu0 %vm1373_vm14, %v1538_v26 }
  0xc8   : > { %4445 = vmatprep.subr.msk.mxu0 %vm1373_vm14, %v4869_v6  ;;  %4441 = vmatmul.mubr.msk.f32.vlgmr.msra.gmra.mxu0 %vm1369_vm15, %v1343_v37 }
  0xc9   : > { %v1887_v33 = vpop.permute.xlu1 %1886  ;;  %4446 = vmatpush1.msk.msra.mxu0 %vm1373_vm14, %v4862_v5  ;;  %1785 = vmatprep.mubr.f32.mxu0 %v4672_v0 }
  0xca   : > { %v5014_v29 = vpop.permute.xlu0 %1796 }
  0xcb   : > { %v5020_v31 = vsel %vm909_vm10, %v1795_v30, %v5014_v29 }
  0xcc   : > { %4447 = vmatmul.mubr.msk.f32.vlgmr.msra.gmra.mxu0 %vm1369_vm15, %v1345_v41 }
  0xcd   : > { %v2069_v38 = vpop.permute.xlu1 %2068  ;;  %1969 = vmatprep.mubr.f32.mxu0 %v4672_v0 }
  0xce   : > { %v1889_v32 = vpop.permute.xlu0 %1888  ;;  %v2073_v39 = vsel %vm1168_vm12, %v2069_v38, 0.0 }
  0xcf   : > { %v1893_v34 = vsel %vm996_vm11, %v1889_v32, 0.0  ;;  %v1890_v36 = vsel %vm996_vm11, %v1887_v33, %v1889_v32  ;;  %v2075_v40 = vmul.f32 %v4919_v24, %v2073_v39  ;;  %v1631_v39 = vmul.f32 %v4902_v14, %v5008_v27 }
  0xd0   : > { %v1895_v35 = vmul.f32 %v4902_v14, %v1893_v34  ;;  %v1894_v6 = vmul.f32 %v4907_v18, %v1890_v36 }
  0xd1   : > { %v2067_v5 = vpop.permute.xlu1 %2066 }
  0xd2   : > { %4451 = vmatprep.subr.msk.mxu0 %vm1373_vm14, %v1895_v35  ;;  %v2070_v42 = vsel %vm1168_vm12, %v2067_v5, %v2069_v38  ;;  %v1359_v35 = vsel %vm490_vm1, 0.0, %v4988_v7  ;;  %v1361_v38 = vmul.f32 %v4902_v14, %v4994_v10  ;;  %v1629_v7 = vsel %vm746_vm9, 0.0, %v5001_v20  ;;  %v1341_v10 = vld [vmem:[%s5563_s4] sm:$0xff]  ;;  %v1981_v27 = vpop.permute.xlu0 %1980  ;;  %v1344_v20 = vld [vmem:[%s5563_s4 + $0x18] sm:$0xff] }
  0xd3   : > { %4452 = vmatpush1.msk.msra.mxu0 %vm1373_vm14, %v1894_v6  ;;  %v2074_v43 = vmul.f32 %v4916_v23, %v2070_v42  ;;  %v1260_v6 = vld [vmem:[%s5564_s3] sm:$0xf]  ;;  %v1802_v5 = vmul.f32 %v4916_v23, %v5020_v31  ;;  %v1984_v42 = vsel %vm1083_vm13, %v1981_v27, 0.0  ;;  %v1348_v31 = vld [vmem:[%s5563_s4 + $0x38] sm:$0xff] }
  0xd4   : > { %4457 = vmatprep.subr.msk.mxu0 %vm1373_vm14, %v2075_v40  ;;  %4453 = vmatmul.mubr.msk.f32.vlgmr.msra.gmra.mxu0 %vm1369_vm15, %v1347_v44  ;;  %v1360_v40 = vmul.f32 %v4907_v18, %v1359_v35  ;;  %v1346_v44 = vld [vmem:[%s5563_s4 + $0x28] sm:$0xff] }
  0xd5   : > { %4458 = vmatpush1.msk.msra.mxu0 %vm1373_vm14, %v2074_v43  ;;  %2149 = vmatprep.mubr.f32.mxu0 %v4672_v0 }
  0xd6   : > { %v1979_v43 = vpop.permute.xlu0 %1978 }
  0xd8   : > { %4459 = vmatmul.mubr.msk.f32.vlgmr.msra.gmra.mxu0 %vm1369_vm15, %v1349_v45  ;;  %v1982_v45 = vsel %vm1083_vm13, %v1979_v43, %v1981_v27 }
  0xd9   : > { %2325 = vmatprep.mubr.f32.mxu0 %v4672_v0 }
 0x123   : > { %v1263_v35 = vpop.permute.xlu1 %1262 }
 0x159   : > { %v576_v48 = vpop.f32.mrf.mxu0 }
 0x15b   : > { %v578_v49 = vpop.f32.mrf.mxu0  ;;  %v650_v50 = vpop.f32.mrf.mxu1 }
 0x15c   : > { %v651_v51 = vadd.f32 %v650_v50, %v576_v48 }
 0x15d   : > { %v652_v52 = vpop.f32.mrf.mxu1 }
 0x15e   : > { %v653_v53 = vadd.f32 %v652_v52, %v578_v49 }
 0x15f   : > { %v735_v54 = vpop.f32.mrf.mxu0 }
 0x160   : > { %v740_v55 = vadd.f32 %v735_v54, %v651_v51 }
 0x161   : > { %v737_v56 = vpop.f32.mrf.mxu0 }
 0x162   : > { %v741_v57 = vadd.f32 %v737_v56, %v653_v53 }
 0x163   : > { %v822_v58 = vpop.f32.mrf.mxu1  ;;  %v898_v59 = vpop.f32.mrf.mxu0 }
 0x164   : > { %v827_v60 = vadd.f32 %v822_v58, %v740_v55 }
 0x165   : > { %v824_v61 = vpop.f32.mrf.mxu1  ;;  %v900_v63 = vpop.f32.mrf.mxu0 }
 0x166   : > { %v828_v62 = vadd.f32 %v824_v61, %v741_v57  ;;  %v903_v1 = vadd.f32 %v898_v59, %v827_v60 }
 0x167   : > { %v985_v2 = vpop.f32.mrf.mxu1 }
 0x168   : > { %v904_v3 = vadd.f32 %v900_v63, %v828_v62  ;;  %v990_v11 = vadd.f32 %v985_v2, %v903_v1 }
 0x169   : > { %v987_v9 = vpop.f32.mrf.mxu1 }
 0x16a   : > { %v991_v13 = vadd.f32 %v987_v9, %v904_v3 }
 0x16b   : > { %v1072_v12 = vpop.f32.mrf.mxu0 }
 0x16c   : > { %v1077_v16 = vadd.f32 %v1072_v12, %v990_v11 }
 0x16d   : > { %v1074_v15 = vpop.f32.mrf.mxu0 }
 0x16e   : > { %v1078_v19 = vadd.f32 %v1074_v15, %v991_v13 }
 0x170   : > { %v1157_v17 = vpop.f32.mrf.mxu1 }
 0x171   : > { %v1162_v21 = vadd.f32 %v1157_v17, %v1077_v16 }
 0x172   : > { %v1159_v22 = vpop.f32.mrf.mxu1  ;;  %v1244_v25 = vpop.f32.mrf.mxu0 }
 0x173   : > { %v1163_v26 = vadd.f32 %v1159_v22, %v1078_v19  ;;  %v1249_v28 = vadd.f32 %v1244_v25, %v1162_v21 }
 0x174   : > { %v1246_v30 = vpop.f32.mrf.mxu0 }
 0x175   : > { %v1250_v32 = vadd.f32 %v1246_v30, %v1163_v26  ;;  %v1256_v33 = vadd.f32 %v4990_v8, %v1249_v28 }
 0x177   : > { %v1257_v34 = vadd.f32 %v4990_v8, %v1250_v32  ;;  %v1258_v37 = vmax.f32 %v1256_v33, 0.0  ;;  %v1801_v8 = vsel %vm909_vm10, %v5014_v29, 0.0  ;;  %v1630_v29 = vmul.f32 %v4907_v18, %v1629_v7  ;;  %v2160_v33 = vpop.permute.xlu0 %2159  ;;  %v2166_v7 = vld [vmem:[%s5565_s5] sm:$0xf]  ;;  %s5566_s5 = smov 112  }
 0x178   : > { %v1803_v41 = vmul.f32 %v4919_v24, %v1801_v8 }
 0x179   : > { %v1259_v36 = vmax.f32 %v1257_v34, 0.0 }
 0x17b   : > { %1298 = vmatprep.subr.mxu1 %v1259_v36 }
 0x17c   : > { %1299 = vmatpush1.msra.mxu1 %v1258_v37 }
 0x17d   : > { %4432 = vmatmul.mubr.msk.f32.vlgmr.msra.gmra.mxu1 %vm506_vm7, %v1260_v6  ;;  %4436 = vmatprep.subr.msk.mxu1 %vm1373_vm14, %v1361_v38 }
 0x17e   : > { %4437 = vmatpush1.msk.msra.mxu1 %vm1373_vm14, %v1360_v40  ;;  %1523 = vmatprep.mubr.f32.mxu1 %v4672_v0 }
 0x17f   : > { %4442 = vmatprep.subr.msk.mxu1 %vm1373_vm14, %v1631_v39 }
 0x181   : > { %4438 = vmatmul.mubr.msk.f32.vlgmr.msra.gmra.mxu1 %vm1369_vm15, %v1341_v10 }
 0x182   : > { %4443 = vmatpush1.msk.msra.mxu1 %vm1373_vm14, %v1630_v29  ;;  %1705 = vmatprep.mubr.f32.mxu1 %v4672_v0  ;;  %v1445_v48 = vpop.f32.mrf.mxu0 }
 0x183   : > { %4448 = vmatprep.subr.msk.mxu1 %vm1373_vm14, %v1803_v41  ;;  %v2169_v41 = vpop.permute.xlu1 %2168 }
 0x184   : > { %v1447_v49 = vpop.f32.mrf.mxu0 }
 0x185   : > { %4444 = vmatmul.mubr.msk.f32.vlgmr.msra.gmra.mxu1 %vm1369_vm15, %v1344_v20 }
 0x186   : > { %4449 = vmatpush1.msk.msra.mxu1 %vm1373_vm14, %v1802_v5  ;;  %1877 = vmatprep.mubr.f32.mxu1 %v4672_v0 }
 0x187   : > { %4454 = vmatprep.subr.msk.mxu1 %vm1373_vm14, %v1984_v42 }
 0x188   : > { %v1615_v50 = vpop.f32.mrf.mxu0 }
 0x189   : > { %4450 = vmatmul.mubr.msk.f32.vlgmr.msra.gmra.mxu1 %vm1369_vm15, %v1346_v44 }
 0x18a   : > { %4455 = vmatpush1.msk.msra.mxu1 %vm1373_vm14, %v1982_v45  ;;  %2057 = vmatprep.mubr.f32.mxu1 %v4672_v0  ;;  %v1617_v51 = vpop.f32.mrf.mxu0  ;;  %v2250_v45 = vpop.permute.xlu0 %2249 }
 0x18c   : > { %v1787_v53 = vpop.f32.mrf.mxu0 }
 0x18d   : > { %4456 = vmatmul.mubr.msk.f32.vlgmr.msra.gmra.mxu1 %vm1369_vm15, %v1348_v31 }
 0x18e   : > { %2238 = vmatprep.mubr.f32.mxu1 %v4672_v0  ;;  %v1789_v56 = vpop.f32.mrf.mxu0 }
 0x194   : > { %v1971_v62 = vpop.f32.mrf.mxu0 }
 0x196   : > { %v1973_v12 = vpop.f32.mrf.mxu0 }
 0x198   : > { %v2151_v22 = vpop.f32.mrf.mxu0 }
 0x19a   : > { %v2153_v34 = vpop.f32.mrf.mxu0 }
 0x23d   : > { %v1334_v52 = vpop.f32.mrf.mxu1 }
 0x23e   : > { %v5120_v39 = vadd.f32 %v1334_v52, %v1263_v35 }
 0x23f   : > { %v1336_v54 = vpop.f32.mrf.mxu1 }
 0x240   : > { %v5118_v6 = vadd.f32 %v1336_v54, %v1263_v35  ;;  %v1339_v27 = vmax.f32 %v5120_v39, 0.0  ;;  %v2415_v54 = vld [vmem:[%s5527_s10] sm:$0xff] }
 0x241   : > { %v1525_v55 = vpop.f32.mrf.mxu1 }
 0x242   : > { %v1526_v57 = vadd.f32 %v1525_v55, %v1445_v48  ;;  %v1340_v10 = vmax.f32 %v5118_v6, 0.0  ;;  %v5152_v55 = vld [vmem:[%s5523_s6] sm:$0xff] }
 0x243   : > { %v1527_v58 = vpop.f32.mrf.mxu1  ;;  %2546 = vrot.lane.b32.xlu0 %v5152_v55, %s4685_s2 }
 0x244   : > { %v1620_v59 = vadd.f32 %v1615_v50, %v1526_v57  ;;  %v1528_v60 = vadd.f32 %v1527_v58, %v1447_v49  ;;  %v5166_v57 = vld [vmem:[%s5523_s6 + $0x18] sm:$0xff]  ;;  %v5171_v58 = vld [vmem:[%s5523_s6 + $0x10] sm:$0xff] }
 0x245   : > { %v1707_v61 = vpop.f32.mrf.mxu1 }
 0x246   : > { %v1621_v63 = vadd.f32 %v1617_v51, %v1528_v60  ;;  %v1712_v1 = vadd.f32 %v1707_v61, %v1620_v59  ;;  %v5180_v59 = vld [vmem:[%s5523_s6 + $0x20] sm:$0xff]  ;;  %v5185_v60 = vld [vmem:[%s5523_s6 + $0x28] sm:$0xff] }
 0x247   : > { %v1709_v2 = vpop.f32.mrf.mxu1 }
 0x248   : > { %v1792_v3 = vadd.f32 %v1787_v53, %v1712_v1  ;;  %v1713_v9 = vadd.f32 %v1709_v2, %v1621_v63 }
 0x249   : > { %v1879_v11 = vpop.f32.mrf.mxu1 }
 0x24a   : > { %v1793_v13 = vadd.f32 %v1789_v56, %v1713_v9  ;;  %v1884_v15 = vadd.f32 %v1879_v11, %v1792_v3  ;;  %v5159_v56 = vld [vmem:[%s5523_s6 + $0x8] sm:$0xff] }
 0x24b   : > { %v1881_v16 = vpop.f32.mrf.mxu1  ;;  %2801 = vrot.lane.b32.xlu0 %v5159_v56, %s4685_s2 }
 0x24c   : > { %v1976_v17 = vadd.f32 %v1971_v62, %v1884_v15  ;;  %v1885_v19 = vadd.f32 %v1881_v16, %v1793_v13 }
 0x24d   : > { %v2059_v21 = vpop.f32.mrf.mxu1 }
 0x24e   : > { %v1977_v25 = vadd.f32 %v1973_v12, %v1885_v19  ;;  %v2064_v26 = vadd.f32 %v2059_v21, %v1976_v17 }
 0x24f   : > { %v2061_v28 = vpop.f32.mrf.mxu1  ;;  %3170 = vrot.lane.b32.xlu0 %v5166_v57, %s4685_s2 }
 0x250   : > { %v2156_v30 = vadd.f32 %v2151_v22, %v2064_v26  ;;  %v2065_v32 = vadd.f32 %v2061_v28, %v1977_v25  ;;  %v5250_v25 = vld [vmem:[%s5523_s6 + $0x38] sm:$0xff]  ;;  %v5259_v26 = vld [vmem:[%s5523_s6 + $0x40] sm:$0xff]  ;;  %v5274_v28 = vld [vmem:[%s5523_s6 + $0x30] sm:$0xff] }
 0x252   : > { %v2157_v36 = vadd.f32 %v2153_v34, %v2065_v32  ;;  %v2162_v37 = vadd.f32 %v2160_v33, %v2156_v30  ;;  %v4686_v30 = vmov 4  }
 0x253   : > { %3333 = vrot.lane.b32.xlu0 %v5180_v59, %s4685_s2 }
 0x254   : > { %v2163_v38 = vadd.f32 %v2160_v33, %v2157_v36  ;;  %v2164_v8 = vmax.f32 %v2162_v37, 0.0  ;;  %4594 = vset.pattern.permute.xlu0 %v4686_v30 }
 0x256   : > { %v2165_v40 = vmax.f32 %v2163_v38, 0.0 }
 0x258   : > { %2204 = vmatprep.subr.mxu1 %v2165_v40 }
 0x259   : > { %2205 = vmatpush1.msra.mxu1 %v2164_v8 }
 0x25a   : > { %4460 = vmatmul.mubr.msk.f32.vlgmr.msra.gmra.mxu1 %vm506_vm7, %v2166_v7  ;;  %4464 = vmatprep.subr.msk.mxu1 %vm2254_vm0, %v1340_v10 }
 0x25b   : > { %4465 = vmatpush1.msk.msra.mxu1 %vm2254_vm0, %v1339_v27  ;;  %2404 = vmatprep.mubr.f32.mxu1 %v4672_v0 }
 0x25e   : > { %4466 = vmatmul.mubr.msk.f32.vlgmr.msra.gmra.mxu1 %vm2251_vm3, %v2247_v46 }
 0x25f   : > { %2620 = vmatprep.mubr.f32.mxu1 %v4672_v0 }
 0x2b5   : > { %v2547_v32 = vpop.permute.xlu0 %2546 }
 0x2bd   : > { %v2802_v33 = vpop.permute.xlu0 %2801 }
 0x2c1   : > { %v5289_v34 = vpop.permute.xlu0 %3170 }
 0x2c5   : > { %v5291_v35 = vpop.permute.xlu0 %3333 }
 0x31a   : > { %v2240_v29 = vpop.f32.mrf.mxu1 }
 0x31b   : > { %v2241_v20 = vadd.f32 %v2240_v29, %v2169_v41 }
 0x31c   : > { %v2242_v5 = vpop.f32.mrf.mxu1 }
 0x31d   : > { %v5135_v42 = vadd.f32 %v2242_v5, %v2169_v41  ;;  %v2245_v44 = vmax.f32 %v2241_v20, 0.0 }
 0x31e   : > { %v2406_v31 = vpop.f32.mrf.mxu1 }
 0x31f   : > { %v2246_v43 = vmax.f32 %v5135_v42, 0.0 }
 0x320   : > { %v2408_v47 = vpop.f32.mrf.mxu1 }
 0x321   : > { %4461 = vmatprep.subr.msk.mxu0 %vm2254_vm0, %v2246_v43 }
 0x322   : > { %4462 = vmatpush1.msk.msra.mxu0 %vm2254_vm0, %v2245_v44 }
 0x323   : > { %4463 = vmatmul.mubr.msk.f32.vlgmr.msra.gmra.mxu0 %vm2251_vm3, %v2250_v45 }
 0x324   : > { %2483 = vmatprep.mubr.f32.mxu0 %v4672_v0 }
 0x3e3   : > { %v2327_v46 = vpop.f32.mrf.mxu0 }
 0x3e4   : > { %v2407_v49 = vadd.f32 %v2406_v31, %v2327_v46 }
 0x3e5   : > { %v2329_v48 = vpop.f32.mrf.mxu0 }
 0x3e6   : > { %v2409_v50 = vadd.f32 %v2408_v47, %v2329_v48 }
 0x3e8   : > { %v2411_v51 = vadd.f32 %v2409_v50, %v2407_v49 }
 0x3ea   : > { %2412 = vadd.xlane.f32.xlu1 %v2411_v51 }
 0x3fb   : > { %2985 = vrot.lane.b32.xlu1 %v5171_v58, %s4685_s2 }
 0x3ff   : > { %3516 = vrot.lane.b32.xlu1 %v5185_v60, %s4685_s2 }
 0x473   : > { %v2413_v52 = vpop.xlane.xlu1 %2412 }
 0x474   : > { %v2414_v53 = vmax.f32 %v2413_v52, 0.0 }
 0x476   : > { %2449 = vmatprep.subr.mxu0 %v2414_v53 }
 0x477   : > { %2450 = vmatpush1.msra.mxu0 %v2414_v53  ;;  %v5293_v37 = vpop.permute.xlu1 %2985 }
 0x478   : > { %4467 = vmatmul.mubr.msk.f32.vlgmr.msra.gmra.mxu0 %vm506_vm7, %v2415_v54 }
 0x479   : > { %2699 = vmatprep.mubr.f32.mxu0 %v4672_v0 }
 0x47b   : > { %v5297_v39 = vpop.permute.xlu1 %3516 }
 0x538   : > { %v2485_v61 = vpop.f32.mrf.mxu0 }
 0x539   : > { %v4468_v62 = vmul.f32 -1.442695, %v2485_v61 }
 0x53a   : > { %v2487_v63 = vpop.f32.mrf.mxu0 }
 0x53b   : > { %4599 = vpow2.f32 %v4468_v62  ;;  %v4469_v1 = vmul.f32 -1.442695, %v2487_v63 }
 0x53d   : > { %4601 = vpow2.f32 %v4469_v1 }
 0x548   : > { %v4600_v2 = vpop.eup %4599 }
 0x549   : > { %v2496_v3 = vadd.f32 1.0, %v4600_v2 }
 0x54a   : > { %v4602_v9 = vpop.eup %4601 }
 0x54b   : > { %4603 = vrcp.f32 %v2496_v3  ;;  %v2497_v11 = vadd.f32 1.0, %v4602_v9 }
 0x54d   : > { %4605 = vrcp.f32 %v2497_v11 }
 0x558   : > { %v4604_v12 = vpop.eup %4603 }
 0x559   : > { %v5191_v13 = vmul.f32 %v4604_v12, %v1339_v27  ;;  %v2506_v15 = vrot.slane %v4604_v12, 4 }
 0x55a   : > { %v4606_v17 = vpop.eup %4605 }
 0x55b   : > { %2883 = vrot.lane.b32.xlu1 %v5191_v13, %s5558_s26  ;;  %2523 = vrot.lane.b32.xlu0 %v5191_v13, %s5556_s1  ;;  %v5205_v16 = vmul.f32 %v2506_v15, %v2245_v44  ;;  %v5213_v19 = vmul.f32 %v4606_v17, %v1340_v10  ;;  %v2507_v21 = vrot.slane %v4606_v17, 4 }
 0x55d   : > { %v5229_v22 = vmul.f32 %v2507_v21, %v2246_v43 }
 0x55f   : > { %3068 = vrot.lane.b32.xlu1 %v5191_v13, %s5559_s16  ;;  %2706 = vrot.lane.b32.xlu0 %v5191_v13, %s5557_s20 }
 0x563   : > { %3599 = vrot.lane.b32.xlu1 %v5191_v13, %s5561_s18  ;;  %3414 = vrot.lane.b32.xlu0 %v5191_v13, %s5560_s17 }
 0x567   : > { %3160 = vrot.lane.b32.xlu1 %v5205_v16, %s5559_s16  ;;  %2535 = vrot.lane.b32.xlu0 %v5205_v16, %s5556_s1 }
 0x56b   : > { %3416 = vrot.lane.b32.xlu1 %v5213_v19, %s5560_s17  ;;  %2525 = vrot.lane.b32.xlu0 %v5213_v19, %s5556_s1 }
 0x56f   : > { %3506 = vrot.lane.b32.xlu1 %v5205_v16, %s5560_s17  ;;  %2708 = vrot.lane.b32.xlu0 %v5213_v19, %s5557_s20 }
 0x573   : > { %3786 = vrot.lane.b32.xlu1 %v5213_v19, %s5566_s5  ;;  %2794 = vrot.lane.b32.xlu0 %v5205_v16, %s5557_s20 }
 0x577   : > { %3508 = vrot.lane.b32.xlu1 %v5229_v22, %s5560_s17  ;;  %2885 = vrot.lane.b32.xlu0 %v5213_v19, %s5558_s26  ;;  %s4533_s17 = sshll.u32 %s4776_s25, 7 }
 0x578   : > { %s4334_s28 = scalar_lea.hbm %s5529_s12, %s4533_s17 }
 0x57b   : > { %3784 = vrot.lane.b32.xlu1 %v5191_v13, %s5566_s5  ;;  %2975 = vrot.lane.b32.xlu0 %v5205_v16, %s5558_s26 }
 0x57f   : > { %3963 = vrot.lane.b32.xlu1 %v5213_v19, %s5567_s15  ;;  %3070 = vrot.lane.b32.xlu0 %v5213_v19, %s5559_s16 }
 0x583   : > { %3961 = vrot.lane.b32.xlu1 %v5191_v13, %s5567_s15  ;;  %3601 = vrot.lane.b32.xlu0 %v5213_v19, %s5561_s18 }
 0x587   : > { %3691 = vrot.lane.b32.xlu0 %v5205_v16, %s5561_s18  ;;  %3879 = vrot.lane.b32.xlu1 %v5250_v25, %s4685_s2 }
 0x58b   : > { %2537 = vrot.lane.b32.xlu0 %v5229_v22, %s5556_s1  ;;  %4063 = vrot.lane.b32.xlu1 %v5259_v26, %s4685_s2 }
 0x58f   : > { %2796 = vrot.lane.b32.xlu0 %v5229_v22, %s5557_s20 }
 0x593   : > { %2977 = vrot.lane.b32.xlu0 %v5229_v22, %s5558_s26 }
 0x597   : > { %3162 = vrot.lane.b32.xlu0 %v5229_v22, %s5559_s16 }
 0x59b   : > { %3701 = vrot.lane.b32.xlu0 %v5274_v28, %s4685_s2  ;;  %s4689_s2 = smov [#allocation2]  }
 0x59c   : > { %s4614_s20 = sshll.u32 %s4689_s2, 4  ;;  %s4615_s20 = int_to_ptr.vmem [resolvable:$false] %s4614_s20 }
 0x59d   : > { %s4616_s25 = scalar_lea.vmem %s4615_s20, 256 }
 0x59f   : > { %3872 = vrot.lane.b32.xlu0 %v5205_v16, %s5566_s5 }
 0x5a3   : > { %3693 = vrot.lane.b32.xlu0 %v5229_v22, %s5561_s18 }
 0x5a7   : > { %3874 = vrot.lane.b32.xlu0 %v5229_v22, %s5566_s5  ;;  %s419_s5 = sand.u32 1, %s4662_s22  }
 0x5a8   : > { %s4322_s29 = scalar_lea.sflag [#allocation3], %s419_s5 }
 0x5ab   : > { %4055 = vrot.lane.b32.xlu0 %v5229_v22, %s5567_s15 }
 0x5af   : > { %4053 = vrot.lane.b32.xlu0 %v5205_v16, %s5567_s15  ;;  %s4411_s15 = sshll.u32 %s419_s5, 3 }
 0x5b0   : > { %s421_s0 = scalar_lea.vmem [#allocation2], %s4411_s15 }
 0x5b1   : > { %s4336_s3 = sshll.u32 %s421_s0, 4  ;;  %s4337_s3 = int_to_ptr.vmem [resolvable:$true] %s4336_s3 }
 0x5b2   : > { %s4610_s1 = scalar_lea.vmem %s4337_s3, 128  ;;  %p4617_p0 = scmp.lt.s32.totalorder %s4337_s3, %s4615_s20 }
 0x5b3   : > { %4147 = vperm.xlu0 %4594, %v4860_v4   ;;  %p4611_p11 = scmp.ne.s32.totalorder %s4337_s3, %s4610_s1  ;;  %p4618_p1 = scmp.lt.s32.totalorder %s4616_s25, %s4610_s1 }
 0x5b5   : > { %p4612_p12 = pnand %p4611_p11, %p4793_p5  ;;  %p4619_p2 = por %p4618_p1, %p4617_p0 }
 0x5b7   : > { %p4613_p13 = pneg %p4612_p12 }
 0x5b9   : > { %p4620_p3 = pnand %p4619_p2, %p4613_p13 }
 0x5cd   : > { %v2524_v36 = vpop.permute.xlu0 %2523  ;;  %v2884_v8 = vpop.permute.xlu1 %2883 }
 0x5ce   : > { %v2530_v7 = vsel %vm490_vm1, 0.0, %v2524_v36  ;;  %v2890_v2 = vsel %vm659_vm8, 0.0, %v2884_v8 }
 0x5cf   : > { %v2531_v41 = vmul.f32 %v4907_v18, %v2530_v7  ;;  %v2891_v21 = vmul.f32 %v4916_v23, %v2890_v2 }
 0x5d1   : > { %v2707_v6 = vpop.permute.xlu0 %2706  ;;  %v3069_v20 = vpop.permute.xlu1 %3068 }
 0x5d2   : > { %v2712_v3 = vsel %vm501_vm2, 0.0, %v2707_v6 }
 0x5d5   : > { %v5295_v38 = vpop.permute.xlu0 %3414  ;;  %v5308_v42 = vpop.permute.xlu1 %3599 }
 0x5d9   : > { %v2536_v40 = vpop.permute.xlu0 %2535  ;;  %v3161_v45 = vpop.permute.xlu1 %3160 }
 0x5da   : > { %v2542_v50 = vsel %vm490_vm1, 0.0, %v2536_v40 }
 0x5db   : > { %v2543_v54 = vmul.f32 %v4907_v18, %v2542_v50 }
 0x5dd   : > { %v2526_v10 = vpop.permute.xlu0 %2525  ;;  %v5310_v46 = vpop.permute.xlu1 %3416 }
 0x5de   : > { %v2527_v4 = vsel %vm490_vm1, %v2524_v36, %v2526_v10  ;;  %v3075_v36 = vsel %vm746_vm9, 0.0, %v3069_v20 }
 0x5df   : > { %v2532_v27 = vmul.f32 %v4902_v14, %v2527_v4  ;;  %v3076_v10 = vmul.f32 %v4907_v18, %v3075_v36 }
 0x5e1   : > { %4473 = vmatprep.subr.msk.mxu0 %vm2254_vm0, %v2532_v27  ;;  %v2709_v29 = vpop.permute.xlu0 %2708  ;;  %v5316_v49 = vpop.permute.xlu1 %3506 }
 0x5e2   : > { %4474 = vmatpush1.msk.msra.mxu0 %vm2254_vm0, %v2531_v41  ;;  %v2710_v63 = vsel %vm501_vm2, %v2707_v6, %v2709_v29  ;;  %v3421_v41 = vsel %vm909_vm10, %v5310_v46, 0.0 }
 0x5e3   : > { %4475 = vmatmul.mubr.msk.f32.vlgmr.msra.gmra.mxu0 %vm2251_vm3, %v5152_v55 }
 0x5e4   : > { %2874 = vmatprep.mubr.f32.mxu0 %v4672_v0 }
 0x5e5   : > { %v2795_v5 = vpop.permute.xlu0 %2794  ;;  %v5322_v55 = vpop.permute.xlu1 %3786 }
 0x5e6   : > { %v2800_v11 = vsel %vm501_vm2, 0.0, %v2795_v5 }
 0x5e9   : > { %v2886_v43 = vpop.permute.xlu0 %2885  ;;  %v3509_v30 = vpop.permute.xlu1 %3508 }
 0x5ea   : > { %v2887_v61 = vsel %vm659_vm8, %v2884_v8, %v2886_v43 }
 0x5eb   : > { %v2892_v9 = vmul.f32 %v4919_v24, %v2887_v61 }
 0x5ed   : > { %v2976_v44 = vpop.permute.xlu0 %2975  ;;  %v3785_v29 = vpop.permute.xlu1 %3784 }
 0x5ee   : > { %v2982_v15 = vsel %vm659_vm8, 0.0, %v2976_v44 }
 0x5ef   : > { %v2983_v8 = vmul.f32 %v4916_v23, %v2982_v15 }
 0x5f1   : > { %v3071_v31 = vpop.permute.xlu0 %3070 }
 0x5f2   : > { %v3072_v12 = vsel %vm746_vm9, %v3069_v20, %v3071_v31  ;;  %v3513_v20 = vsel %vm909_vm10, %v3509_v30, 0.0 }
 0x5f3   : > { %v3077_v6 = vmul.f32 %v4902_v14, %v3072_v12  ;;  %v3515_v43 = vmul.f32 %v4919_v24, %v3513_v20 }
 0x5f5   : > { %v5312_v47 = vpop.permute.xlu0 %3601 }
 0x5f9   : > { %v5314_v48 = vpop.permute.xlu0 %3691 }
 0x5fd   : > { %v2538_v51 = vpop.permute.xlu0 %2537 }
 0x5fe   : > { %v2539_v52 = vsel %vm490_vm1, %v2536_v40, %v2538_v51 }
 0x5ff   : > { %v2544_v53 = vmul.f32 %v4902_v14, %v2539_v52 }
 0x601   : > { %4470 = vmatprep.subr.msk.mxu1 %vm2254_vm0, %v2544_v53  ;;  %v2797_v62 = vpop.permute.xlu0 %2796 }
 0x602   : > { %v2798_v1 = vsel %vm501_vm2, %v2795_v5, %v2797_v62  ;;  %4471 = vmatpush1.msk.msra.mxu1 %vm2254_vm0, %v2543_v54 }
 0x603   : > { %4472 = vmatmul.mubr.msk.f32.vlgmr.msra.gmra.mxu1 %vm2251_vm3, %v2547_v32  ;;  %4476 = vmatprep.subr.msk.mxu1 %vm2254_vm0, %v2710_v63  ;;  %v4687_v63 = vmov 5  }
 0x604   : > { %4479 = vmatprep.subr.msk.mxu0 %vm2254_vm0, %v2798_v1  ;;  %4477 = vmatpush1.msk.msra.mxu1 %vm2254_vm0, %v2712_v3  ;;  %v5469_v1 = vld [vmem:[%s5528_s11] sm:$0xff] }
 0x605   : > { %4480 = vmatpush1.msk.msra.mxu0 %vm2254_vm0, %v2800_v11  ;;  %v2978_v17 = vpop.permute.xlu0 %2977  ;;  %4482 = vmatprep.subr.msk.mxu1 %vm2254_vm0, %v2892_v9 }
 0x606   : > { %4481 = vmatmul.mubr.msk.f32.vlgmr.msra.gmra.mxu0 %vm2251_vm3, %v2802_v33  ;;  %v2979_v32 = vsel %vm659_vm8, %v2976_v44, %v2978_v17  ;;  %2785 = vmatprep.mubr.f32.mxu1 %v4672_v0  ;;  %v3167_v33 = vsel %vm746_vm9, 0.0, %v3161_v45  ;;  %v3606_v44 = vsel %vm996_vm11, %v5312_v47, 0.0 }
 0x607   : > { %v2984_v40 = vmul.f32 %v4919_v24, %v2979_v32  ;;  %4478 = vmatmul.mubr.msk.f32.vlgmr.msra.gmra.mxu1 %vm2251_vm3, %v5159_v56  ;;  %3059 = vmatprep.mubr.f32.mxu0 %v4672_v0  ;;  %v3168_v27 = vmul.f32 %v4907_v18, %v3167_v33 }
 0x608   : > { %4483 = vmatpush1.msk.msra.mxu1 %vm2254_vm0, %v2891_v21  ;;  %2966 = vmatprep.mubr.f32.mxu1 %v4672_v0 }
 0x609   : > { %4488 = vmatprep.subr.msk.mxu1 %vm2254_vm0, %v3077_v6  ;;  %4485 = vmatprep.subr.msk.mxu0 %vm2254_vm0, %v2984_v40  ;;  %v3163_v7 = vpop.permute.xlu0 %3162 }
 0x60a   : > { %v3164_v4 = vsel %vm746_vm9, %v3161_v45, %v3163_v7  ;;  %4486 = vmatpush1.msk.msra.mxu0 %vm2254_vm0, %v2983_v8  ;;  %4595 = vset.pattern.permute.xlu1 %v4687_v63 }
 0x60b   : > { %v3169_v56 = vmul.f32 %v4902_v14, %v3164_v4  ;;  %4484 = vmatmul.mubr.msk.f32.vlgmr.msra.gmra.mxu1 %vm2251_vm3, %v5171_v58  ;;  %4487 = vmatmul.mubr.msk.f32.vlgmr.msra.gmra.mxu0 %vm2251_vm3, %v5293_v37  ;;  %v3418_v58 = vsel %vm909_vm10, %v5295_v38, %v5310_v46  ;;  %v3423_v37 = vmul.f32 %v4919_v24, %v3421_v41  ;;  %v3964_v38 = vpop.permute.xlu1 %3963 }
 0x60c   : > { %4489 = vmatpush1.msk.msra.mxu1 %vm2254_vm0, %v3076_v10  ;;  %3151 = vmatprep.mubr.f32.mxu1 %v4672_v0 }
 0x60d   : > { %4494 = vmatprep.subr.msk.mxu1 %vm2254_vm0, %v5213_v19  ;;  %v3702_v5 = vpop.permute.xlu0 %3701  ;;  %4491 = vmatprep.subr.msk.mxu0 %vm2254_vm0, %v3169_v56  ;;  %v3510_v19 = vsel %vm909_vm10, %v5316_v49, %v3509_v30  ;;  %v3968_v49 = vsel %vm1168_vm12, %v3964_v38, 0.0 }
 0x60e   : > { %4492 = vmatpush1.msk.msra.mxu0 %vm2254_vm0, %v3168_v27  ;;  %3244 = vmatprep.mubr.f32.mxu0 %v4672_v0  ;;  %v3514_v45 = vmul.f32 %v4916_v23, %v3510_v19 }
 0x60f   : > { %4490 = vmatmul.mubr.msk.f32.vlgmr.msra.gmra.mxu1 %vm2251_vm3, %v5166_v57  ;;  %4493 = vmatmul.mubr.msk.f32.vlgmr.msra.gmra.mxu0 %vm2251_vm3, %v5289_v34  ;;  %v3422_v34 = vmul.f32 %v4916_v23, %v3418_v58  ;;  %v3962_v50 = vpop.permute.xlu1 %3961 }
 0x610   : > { %4495 = vmatpush1.msk.msra.mxu1 %vm2254_vm0, %v5191_v13  ;;  %4497 = vmatprep.subr.msk.mxu0 %vm2254_vm0, %v5229_v22  ;;  %v3603_v13 = vsel %vm996_vm11, %v5308_v42, %v5312_v47  ;;  %v3608_v22 = vmul.f32 %v4902_v14, %v3606_v44  ;;  %v3790_v47 = vsel %vm1083_vm13, %v5322_v55, 0.0 }
 0x611   : > { %4498 = vmatpush1.msk.msra.mxu0 %vm2254_vm0, %v5205_v16  ;;  %4500 = vmatprep.subr.msk.mxu1 %vm2254_vm0, %v3423_v37  ;;  %v3873_v57 = vpop.permute.xlu0 %3872  ;;  %v3607_v31 = vmul.f32 %v4907_v18, %v3603_v13 }
 0x612   : > { %4503 = vmatprep.subr.msk.mxu0 %vm2254_vm0, %v3515_v43  ;;  %3324 = vmatprep.mubr.f32.mxu1 %v4672_v0 }
 0x613   : > { %3405 = vmatprep.mubr.f32.mxu0 %v4672_v0  ;;  %4496 = vmatmul.mubr.msk.f32.vlgmr.msra.gmra.mxu1 %vm2251_vm3, %v5180_v59  ;;  %v3880_v53 = vpop.permute.xlu1 %3879 }
 0x614   : > { %4499 = vmatmul.mubr.msk.f32.vlgmr.msra.gmra.mxu0 %vm2251_vm3, %v5291_v35  ;;  %4501 = vmatpush1.msk.msra.mxu1 %vm2254_vm0, %v3422_v34 }
 0x615   : > { %4504 = vmatpush1.msk.msra.mxu0 %vm2254_vm0, %v3514_v45  ;;  %4506 = vmatprep.subr.msk.mxu1 %vm2254_vm0, %v3608_v22  ;;  %v3694_v16 = vpop.permute.xlu0 %3693 }
 0x616   : > { %v3695_v42 = vsel %vm996_vm11, %v5314_v48, %v3694_v16  ;;  %v3698_v46 = vsel %vm996_vm11, %v3694_v16, 0.0  ;;  %3497 = vmatprep.mubr.f32.mxu1 %v4672_v0  ;;  %3590 = vmatprep.mubr.f32.mxu0 %v4672_v0 }
 0x617   : > { %v3699_v59 = vmul.f32 %v4907_v18, %v3695_v42  ;;  %v3700_v35 = vmul.f32 %v4902_v14, %v3698_v46  ;;  %4502 = vmatmul.mubr.msk.f32.vlgmr.msra.gmra.mxu1 %vm2251_vm3, %v5185_v60  ;;  %v3788_v14 = vsel %vm1083_vm13, %v3785_v29, %v5322_v55  ;;  %v3970_v60 = vmul.f32 %v4919_v24, %v3968_v49 }
 0x618   : > { %4505 = vmatmul.mubr.msk.f32.vlgmr.msra.gmra.mxu0 %vm2251_vm3, %v5297_v39  ;;  %4507 = vmatpush1.msk.msra.mxu1 %vm2254_vm0, %v3607_v31  ;;  %v3965_v39 = vsel %vm1168_vm12, %v3962_v50, %v3964_v38 }
 0x619   : > { %4512 = vmatprep.subr.msk.mxu1 %vm2254_vm0, %v3790_v47  ;;  %v3875_v48 = vpop.permute.xlu0 %3874  ;;  %4509 = vmatprep.subr.msk.mxu0 %vm2254_vm0, %v3700_v35  ;;  %v3969_v54 = vmul.f32 %v4916_v23, %v3965_v39 }
 0x61a   : > { %v3878_v18 = vsel %vm1083_vm13, %v3875_v48, 0.0  ;;  %3682 = vmatprep.mubr.f32.mxu1 %v4672_v0  ;;  %4510 = vmatpush1.msk.msra.mxu0 %vm2254_vm0, %v3699_v59  ;;  %v3876_v51 = vsel %vm1083_vm13, %v3873_v57, %v3875_v48 }
 0x61b   : > { %3775 = vmatprep.mubr.f32.mxu0 %v4672_v0  ;;  %4508 = vmatmul.mubr.msk.f32.vlgmr.msra.gmra.mxu1 %vm2251_vm3, %v5274_v28 }
 0x61c   : > { %4511 = vmatmul.mubr.msk.f32.vlgmr.msra.gmra.mxu0 %vm2251_vm3, %v3702_v5  ;;  %4513 = vmatpush1.msk.msra.mxu1 %vm2254_vm0, %v3788_v14 }
 0x61d   : > { %4515 = vmatprep.subr.msk.mxu0 %vm2254_vm0, %v3878_v18  ;;  %4518 = vmatprep.subr.msk.mxu1 %vm2254_vm0, %v3970_v60  ;;  %v4056_v52 = vpop.permute.xlu0 %4055 }
 0x61e   : > { %4516 = vmatpush1.msk.msra.mxu0 %vm2254_vm0, %v3876_v51  ;;  %v4060_v55 = vsel %vm1168_vm12, %v4056_v52, 0.0  ;;  %3863 = vmatprep.mubr.f32.mxu1 %v4672_v0 }
 0x61f   : > { %v4062_v28 = vmul.f32 %v4919_v24, %v4060_v55  ;;  %4514 = vmatmul.mubr.msk.f32.vlgmr.msra.gmra.mxu1 %vm2251_vm3, %v5250_v25  ;;  %3952 = vmatprep.mubr.f32.mxu0 %v4672_v0  ;;  %v4064_v25 = vpop.permute.xlu1 %4063 }
 0x620   : > { %4519 = vmatpush1.msk.msra.mxu1 %vm2254_vm0, %v3969_v54  ;;  %4517 = vmatmul.mubr.msk.f32.vlgmr.msra.gmra.mxu0 %vm2251_vm3, %v3880_v53 }
 0x621   : > { %v4054_v61 = vpop.permute.xlu0 %4053  ;;  %4521 = vmatprep.subr.msk.mxu0 %vm2254_vm0, %v4062_v28  ;;  %4044 = vmatprep.mubr.f32.mxu1 %v4672_v0 }
 0x622   : > { %v4057_v62 = vsel %vm1168_vm12, %v4054_v61, %v4056_v52  ;;  %4137 = vmatprep.mubr.f32.mxu0 %v4672_v0  ;;  %4156 = vperm.xlu1 %4595, %v5469_v1  }
 0x623   : > { %v4061_v24 = vmul.f32 %v4916_v23, %v4057_v62  ;;  %4520 = vmatmul.mubr.msk.f32.vlgmr.msra.gmra.mxu1 %vm2251_vm3, %v5259_v26 }
 0x624   : > { %4226 = vmatprep.mubr.f32.mxu1 %v4672_v0 }
 0x625   : > { %4522 = vmatpush1.msk.msra.mxu0 %vm2254_vm0, %v4061_v24 }
 0x626   : > { %4523 = vmatmul.mubr.msk.f32.vlgmr.msra.gmra.mxu0 %vm2251_vm3, %v4064_v25 }
 0x627   : > { %4309 = vmatprep.mubr.f32.mxu0 %v4672_v0 }
 0x6a3   : > { %v2701_v23 = vpop.f32.mrf.mxu0 }
 0x6a5   : > { %v2703_v26 = vpop.f32.mrf.mxu0 }
 0x6c3   : > { %v2622_v2 = vpop.f32.mrf.mxu1 }
 0x6c4   : > { %v2702_v9 = vadd.f32 %v2701_v23, %v2622_v2 }
 0x6c5   : > { %v2624_v3 = vpop.f32.mrf.mxu1 }
 0x6c6   : > { %v2876_v11 = vpop.f32.mrf.mxu0  ;;  %v2704_v15 = vadd.f32 %v2703_v26, %v2624_v3 }
 0x6c7   : > { %v2787_v12 = vpop.f32.mrf.mxu1 }
 0x6c8   : > { %v2792_v17 = vadd.f32 %v2787_v12, %v2702_v9  ;;  %v2878_v21 = vpop.f32.mrf.mxu0 }
 0x6c9   : > { %v2789_v0 = vpop.f32.mrf.mxu1 }
 0x6ca   : > { %v2793_v30 = vadd.f32 %v2789_v0, %v2704_v15  ;;  %v2881_v32 = vadd.f32 %v2876_v11, %v2792_v17  ;;  %v4148_v11 = vpop.permute.xlu0 %4147 }
 0x6cb   : > { %v2968_v36 = vpop.f32.mrf.mxu1  ;;  %v3061_v6 = vpop.f32.mrf.mxu0 }
 0x6cc   : > { %v2973_v40 = vadd.f32 %v2968_v36, %v2881_v32  ;;  %v2882_v8 = vadd.f32 %v2878_v21, %v2793_v30  ;;  %v4154_v32 = vld [vmem:[%s5524_s7] sm:$0xff]  ;;  %v4688_v36 = vmov 6  }
 0x6cd   : > { %v2970_v33 = vpop.f32.mrf.mxu1  ;;  %v3063_v7 = vpop.f32.mrf.mxu0  ;;  %4596 = vset.pattern.permute.xlu1 %v4688_v36  ;;  %4597 = vset.pattern.permute.xlu0 %v4688_v36 }
 0x6ce   : > { %v3066_v10 = vadd.f32 %v3061_v6, %v2973_v40  ;;  %v2974_v4 = vadd.f32 %v2970_v33, %v2882_v8  ;;  %4239 = vperm.xlu1 %4596, %v5469_v1   ;;  %v4157_v6 = vpop.permute.xlu1 %4156 }
 0x6cf   : > { %v3153_v56 = vpop.f32.mrf.mxu1  ;;  %v3246_v27 = vpop.f32.mrf.mxu0 }
 0x6d0   : > { %v3067_v41 = vadd.f32 %v3063_v7, %v2974_v4  ;;  %v3158_v29 = vadd.f32 %v3153_v56, %v3066_v10  ;;  %v4608_v56 = vld [vmem:[%s4813_s19 + $0x8] sm:$0xff] }
 0x6d1   : > { %v3155_v20 = vpop.f32.mrf.mxu1  ;;  %v3248_v5 = vpop.f32.mrf.mxu0 }
 0x6d2   : > { %v3251_v58 = vadd.f32 %v3246_v27, %v3158_v29  ;;  %v3159_v37 = vadd.f32 %v3155_v20, %v3067_v41  ;;  %v4609_v41 = vld [vmem:[%s4813_s19] sm:$0xff] }
 0x6d3   : > { %v3326_v19 = vpop.f32.mrf.mxu1  ;;  %v4235_v20 = vld [vmem:[%s5525_s8] sm:$0xf] }
 0x6d4   : > { %v3252_v43 = vadd.f32 %v3248_v5, %v3159_v37  ;;  %v3331_v44 = vadd.f32 %v3326_v19, %v3251_v58  ;;  %v3407_v57 = vpop.f32.mrf.mxu0 }
 0x6d5   : > { %v3328_v34 = vpop.f32.mrf.mxu1 }
 0x6d6   : > { %v3412_v38 = vadd.f32 %v3407_v57, %v3331_v44  ;;  %v3332_v45 = vadd.f32 %v3328_v34, %v3252_v43  ;;  %v3409_v13 = vpop.f32.mrf.mxu0 }
 0x6d7   : > { %v3499_v22 = vpop.f32.mrf.mxu1 }
 0x6d8   : > { %v3413_v16 = vadd.f32 %v3409_v13, %v3332_v45  ;;  %v3504_v31 = vadd.f32 %v3499_v22, %v3412_v38  ;;  %v3592_v42 = vpop.f32.mrf.mxu0 }
 0x6d9   : > { %v3501_v46 = vpop.f32.mrf.mxu1 }
 0x6da   : > { %v3597_v59 = vadd.f32 %v3592_v42, %v3504_v31  ;;  %v3505_v35 = vadd.f32 %v3501_v46, %v3413_v16  ;;  %v3594_v47 = vpop.f32.mrf.mxu0 }
 0x6db   : > { %v3684_v49 = vpop.f32.mrf.mxu1 }
 0x6dc   : > { %v3598_v50 = vadd.f32 %v3594_v47, %v3505_v35  ;;  %v3689_v48 = vadd.f32 %v3684_v49, %v3597_v59  ;;  %v3777_v14 = vpop.f32.mrf.mxu0 }
 0x6dd   : > { %v3686_v18 = vpop.f32.mrf.mxu1 }
 0x6de   : > { %v3782_v60 = vadd.f32 %v3777_v14, %v3689_v48  ;;  %v3690_v39 = vadd.f32 %v3686_v18, %v3598_v50  ;;  %v3779_v51 = vpop.f32.mrf.mxu0 }
 0x6df   : > { %v3865_v52 = vpop.f32.mrf.mxu1 }
 0x6e0   : > { %v3783_v53 = vadd.f32 %v3779_v51, %v3690_v39  ;;  %v3870_v54 = vadd.f32 %v3865_v52, %v3782_v60  ;;  %v3954_v55 = vpop.f32.mrf.mxu0 }
 0x6e1   : > { %v3867_v28 = vpop.f32.mrf.mxu1 }
 0x6e2   : > { %v3959_v61 = vadd.f32 %v3954_v55, %v3870_v54  ;;  %v3871_v62 = vadd.f32 %v3867_v28, %v3783_v53  ;;  %v3956_v24 = vpop.f32.mrf.mxu0 }
 0x6e3   : > { %v4046_v25 = vpop.f32.mrf.mxu1 }
 0x6e4   : > { %v3960_v63 = vadd.f32 %v3956_v24, %v3871_v62  ;;  %v4051_v23 = vadd.f32 %v4046_v25, %v3959_v61 }
 0x6e5   : > { %v4048_v26 = vpop.f32.mrf.mxu1 }
 0x6e6   : > { %v4052_v2 = vadd.f32 %v4048_v26, %v3960_v63  ;;  %v4139_v3 = vpop.f32.mrf.mxu0 }
 0x6e7   : > { %v4144_v9 = vadd.f32 %v4139_v3, %v4051_v23 }
 0x6e8   : > { %v4141_v12 = vpop.f32.mrf.mxu0 }
 0x6e9   : > { %v4145_v15 = vadd.f32 %v4141_v12, %v4052_v2  ;;  %v4150_v17 = vadd.f32 %v4148_v11, %v4144_v9 }
 0x6eb   : > { %v4151_v21 = vadd.f32 %v4148_v11, %v4145_v15  ;;  %v4152_v30 = vmax.f32 %v4150_v17, 0.0 }
 0x6ed   : > { %v4153_v0 = vmax.f32 %v4151_v21, 0.0 }
 0x6ef   : > { %4192 = vmatprep.subr.mxu1 %v4153_v0 }
 0x6f0   : > { %4193 = vmatpush1.msra.mxu1 %v4152_v30 }
 0x6f1   : > { %4524 = vmatmul.mubr.msk.f32.vlgmr.msra.gmra.mxu1 %vm506_vm7, %v4154_v32 }
 0x749   : > { %v4240_v5 = vpop.permute.xlu1 %4239 }
 0x7b1   : > { %v4228_v40 = vpop.f32.mrf.mxu1 }
 0x7b2   : > { %v4229_v8 = vadd.f32 %v4228_v40, %v4157_v6 }
 0x7b3   : > { %v4230_v33 = vpop.f32.mrf.mxu1 }
 0x7b4   : > { %v4231_v7 = vadd.f32 %v4230_v33, %v4157_v6  ;;  %v4233_v10 = vmax.f32 %v4229_v8, 0.0 }
 0x7b6   : > { %v4234_v4 = vmax.f32 %v4231_v7, 0.0  ;;  %v4236_v29 = vadd.f32 %v4609_v41, %v4233_v10 }
 0x7b8   : > { %v4237_v27 = vadd.f32 %v4608_v56, %v4234_v4 }
 0x7ba   : > { %4275 = vmatprep.subr.mxu0 %v4237_v27 }
 0x7bb   : > { %4276 = vmatpush1.msra.mxu0 %v4236_v29 }
 0x7bc   : > { %4525 = vmatmul.mubr.msk.f32.vlgmr.msra.gmra.mxu0 %vm506_vm7, %v4235_v20 }
 0x87c   : > { %v4311_v1 = vpop.f32.mrf.mxu0 }
 0x87d   : > { %v4312_v37 = vadd.f32 %v4311_v1, %v4240_v5 }
 0x87e   : > { %v4313_v58 = vpop.f32.mrf.mxu0 }
 0x87f   : > { %v4314_v19 = vadd.f32 %v4313_v58, %v4240_v5 }
 0x881   : > { %v4318_v43 = vcombine.low %v4312_v37, %v4314_v19 }
 0x883   : > { %4320 = vst [vmem:[%s421_s0] sm:$0xff] %v4318_v43 }
 0x884   : > { %4623 = shalt.err (!%p4620_p3)
}
 0x885   : > { %s4624_s26 = scalar_lea.hbm %s4334_s28, 128  ;;  %s4628_s5 = scalar_lea.hbm %s5529_s12, 256 }
 0x886   : > { %p4625_p4 = scmp.ne.s32.totalorder %s4334_s28, %s4624_s26  ;;  %p4629_p9 = scmp.lt.s32.totalorder %s4334_s28, %s5529_s12 }
 0x887   : > { %p4630_p10 = scmp.lt.s32.totalorder %s4628_s5, %s4624_s26 }
 0x888   : > { %p4626_p7 = pnand %p4625_p4, %p4793_p5 }
 0x889   : > { %p4631_p11 = por %p4630_p10, %p4629_p9 }
 0x88a   : > { %p4627_p8 = pneg %p4626_p7 }
 0x88c   : > { %p4632_p12 = pnand %p4631_p11, %p4627_p8 }
 0x88e   : > { %4635 = shalt.err (!%p4632_p12)
}
 0x88f   : > { %4534 = dma.vmem_to_hbm [thread:$0]  (%p4793_p5), %s4337_s3, 128, %s4334_s28, %s4322_s29  }
 0x890 PF: > { %p4540_p13 = scmp.ge.s32.totalorder %s4670_s24, 2  ;;  %s4348_s0 = sand.u32 1, %s4658_s21  }
 0x891   : > { %s4349_s19 = scalar_lea.sflag [#allocation3], %s4348_s0 }
 0x892   : > { %p4537_p0 = pnand %p4540_p13, %p4797_p6 }
 0x894   : > { %p4538_p1 = pneg %p4537_p0 }
 0x896   : > { %4653 = dma.done.wait (%p4538_p1), %s4349_s19, 128  }
 0x897   : > { %4655 = vsyncadd (%p4538_p1), %s4349_s19, 4294967168  ;;  %p22_p2 = scmp.ge.s32.totalorder %s4780_s27, 4   ;;  %s5568_s21 = smov %s4662_s22 }
 0x898   : > { %s5569_s22 = smov %s4666_s23  ;;  %s5570_s23 = smov %s4791_s30 }
 0x899   : > { %s5571_s24 = smov %s4780_s27  ;;  %24 = sbr.rel (!%p22_p2) target bundleno = 10 (0xa), region = 106 }
 0x89e   :  { %4354 = vsyncpa [#allocation3], 1 }
 0x89f   :  { %4356 = vsyncpa [#allocation3 + $0x1], 1 }

</bundles_post_ra>
